<compile_context>
chip_gen: v5e
topology: v5e:2x2
jax: 0.10.0
libtpu: 0.0.40
codegen_flags: <defaults>
</compile_context>

<pallas_src>
import math
import functools

import jax
import jax.numpy as jnp
from jax import lax
from jax.experimental import pallas as pl
from jax.experimental.pallas import tpu as pltpu


def _round_up(n, m):
    return ((n + m - 1) // m) * m


def _tattention_kernel(x_ref, mrow_ref, mcol_ref, wqkv_ref, bqkv_ref, wo_ref,
                       bo_ref, o_ref, qkv_scr, acc_scr, *,
                       batch_block, seq_len, num_heads, compute_dtype):
    num_chunks = 3 * num_heads

    # ---- QKV projection, one 128-lane head-chunk at a time, spilled straight
    # into VMEM scratch (bounds the live range of the big intermediate). ------
    # TODO(synk): on v6e/v7x (256-wide MXU) process head-chunks in pairs (N=256)
    # to fill the MXU; single-chunk N=128 already saturates v5e.
    def proj_body(g, c):
        r = jnp.dot(x_ref[...], wqkv_ref[g], preferred_element_type=jnp.float32)
        qkv_scr[g] = (r + bqkv_ref[g]).astype(compute_dtype)
        return c

    lax.fori_loop(0, num_chunks, proj_body, 0, unroll=True)

    # f32 accumulator for the output projection (stored lane-dense at the end).
    acc_scr[...] = jnp.zeros_like(acc_scr)

    def batch_body(bb, c):
        if batch_block == 1:
            row_ix = slice(None)
        else:
            r0 = pl.multiple_of(bb * seq_len, seq_len)
            row_ix = pl.ds(r0, seq_len)

        # Mask arrives in both layouts -> pure broadcast, no in-kernel transpose;
        # bias hoisted out of the head loop.
        bias = (1.0 - mrow_ref[bb] * mcol_ref[bb]) * (-1000000.0)    # (S, S) f32

        def head_body(h, c2):
            q_h = qkv_scr[h, row_ix, :]                    # (S, hd_pad) lane-dense
            k_h = qkv_scr[num_heads + h, row_ix, :]
            v_h = qkv_scr[2 * num_heads + h, row_ix, :]

            # scores: contract the 128-padded head dim directly (no transpose);
            # 1/sqrt(qkv_dim) is already folded into the q weights.
            s = lax.dot_general(q_h, k_h, (((1,), (1,)), ((), ())),
                                preferred_element_type=jnp.float32) + bias
            # TODO(synk): for long S (esp. v7x, 64 MiB VMEM) tile the key axis here
            # with an online-softmax accumulator instead of the full (S, S) tile.

            # softmax over keys, all elementwise math in f32; EUP reciprocal.
            s_max = jnp.max(s, axis=-1, keepdims=True)
            p = jnp.exp(s - s_max)
            p = p * pl.reciprocal(jnp.sum(p, axis=-1, keepdims=True), approx=True)

            # dropout is identity in eval mode.
            # TODO(synk): training-mode dropout via pltpu.prng_seed/prng_random_bits.
            o_h = jnp.dot(p.astype(compute_dtype), v_h,
                          preferred_element_type=jnp.float32)        # (S, hd_pad)

            # This head's slice of the output projection, accumulated in f32 VMEM
            # (padded v lanes and the matching wo rows are exactly zero).
            acc_scr[row_ix, :] = acc_scr[row_ix, :] + jnp.dot(
                o_h.astype(compute_dtype), wo_ref[h],
                preferred_element_type=jnp.float32)
            return c2

        return lax.fori_loop(0, num_heads, head_body, c, unroll=True)

    lax.fori_loop(0, batch_block, batch_body, 0, unroll=True)

    # Single lane-dense store of the (rows, hidden_pad) output block.
    o_ref[...] = (acc_scr[...] + bo_ref[...]).astype(o_ref.dtype)


def tattention_forward(x, mask, params, *, num_heads, batch_block=1,
                       compute_dtype=jnp.bfloat16):
    """x: (B, S, hidden), mask: (B, S, 1). params: dict of (in,out)-layout weights."""
    B, S, hidden = x.shape
    qkv_dim = params["wq"].shape[1]
    assert qkv_dim % num_heads == 0
    head_dim = qkv_dim // num_heads

    # Keep >= 2 grid steps whenever B allows so both v7x TensorCores get work;
    # single-TC chips (v5e/v6e) just see a somewhat smaller block per step.
    batch_block = max(1, min(batch_block, max(1, B // 2)))
    while B % batch_block:
        batch_block -= 1
    if batch_block > 1:
        assert S % 8 == 0, "per-batch sublane offsets need S % 8 == 0"

    hd_pad = _round_up(head_dim, 128)          # 128-lane-align every head's chunk
    hidden_pad = _round_up(hidden, 128)
    rows = batch_block * S
    scale = 1.0 / math.sqrt(qkv_dim)           # module scales by 1/sqrt(qkv_dim)

    def split_pad_w(w):                        # (hidden, qkv) -> (H, hidden, hd_pad)
        w3 = w.reshape(hidden, num_heads, head_dim)
        w3 = jnp.pad(w3, ((0, 0), (0, 0), (0, hd_pad - head_dim)))
        return jnp.transpose(w3, (1, 0, 2))

    def split_pad_b(b):                        # (1, qkv) -> (H, 1, hd_pad)
        b3 = b.reshape(1, num_heads, head_dim)
        b3 = jnp.pad(b3, ((0, 0), (0, 0), (0, hd_pad - head_dim)))
        return jnp.transpose(b3, (1, 0, 2))

    # Head-major fused QKV weights; 1/sqrt(qkv_dim) folded into the q chunks.
    wqkv = jnp.concatenate([split_pad_w(params["wq"] * scale),
                            split_pad_w(params["wk"]),
                            split_pad_w(params["wv"])], axis=0).astype(compute_dtype)
    bqkv = jnp.concatenate([split_pad_b(params["bq"] * scale),
                            split_pad_b(params["bk"]),
                            split_pad_b(params["bv"])], axis=0).astype(jnp.float32)

    # Output projection: zero rows for padded head lanes, zero cols to hidden_pad.
    wo3 = params["wo"].reshape(num_heads, head_dim, hidden)
    wo = jnp.pad(wo3, ((0, 0), (0, hd_pad - head_dim),
                       (0, hidden_pad - hidden))).astype(compute_dtype)
    bo = jnp.pad(params["bo"], ((0, 0), (0, hidden_pad - hidden))).astype(jnp.float32)

    # Wrapper-side prep: bf16 x (halves the per-step DMA), 2-D lane-dense layout,
    # mask in both (S,1) and (1,S) layouts so the kernel never transposes it.
    x2 = x.reshape(B * S, hidden).astype(compute_dtype)
    mrow = mask.astype(jnp.float32)                      # (B, S, 1)
    mcol = jnp.swapaxes(mrow, -1, -2)                    # (B, 1, S)

    kernel = functools.partial(
        _tattention_kernel, batch_block=batch_block, seq_len=S,
        num_heads=num_heads, compute_dtype=compute_dtype)

    # Grid-invariant operands: whole-array resident in VMEM, no double-buffering.
    # TODO(synk): for hidden/qkv >= 2-4k, stream wqkv/wo in tiles over a reduction
    # grid axis instead of whole-array residency (v7x has only 64 MiB VMEM).
    vmem_full = pl.BlockSpec(memory_space=pltpu.MemorySpace.VMEM)

    isz = jnp.dtype(compute_dtype).itemsize
    est_vmem = (
        2 * rows * hidden * isz                           # x block, double-buffered
        + 2 * rows * hidden_pad * x.dtype.itemsize        # out block, double-buffered
        + 4 * batch_block * S * 4                         # mask blocks (both layouts)
        + 3 * num_heads * hidden * hd_pad * isz           # wqkv (resident)
        + 3 * num_heads * hd_pad * 4                      # bqkv (resident)
        + num_heads * hd_pad * hidden_pad * isz           # wo   (resident)
        + hidden_pad * 4                                  # bo   (resident)
        + 3 * num_heads * rows * hd_pad * isz             # qkv scratch
        + rows * hidden_pad * 4                           # f32 output accumulator
        + 2 * S * S * 4 + 2 * S * hd_pad * 4              # per-head working set
    )
    vmem_limit = int(min(max(2 * est_vmem, 32 * 1024 * 1024), 64 * 1024 * 1024))

    out2 = pl.pallas_call(
        kernel,
        out_shape=jax.ShapeDtypeStruct((B * S, hidden_pad), x.dtype),
        grid_spec=pltpu.PrefetchScalarGridSpec(
            num_scalar_prefetch=0,
            grid=(B // batch_block,),
            in_specs=[
                pl.BlockSpec((rows, hidden), lambda b: (b, 0)),           # x (2-D, bf16)
                pl.BlockSpec((batch_block, S, 1), lambda b: (b, 0, 0)),   # mask rows
                pl.BlockSpec((batch_block, 1, S), lambda b: (b, 0, 0)),   # mask cols
                vmem_full,   # wqkv (3H, hidden, hd_pad)
                vmem_full,   # bqkv (3H, 1, hd_pad)
                vmem_full,   # wo   (H, hd_pad, hidden_pad)
                vmem_full,   # bo   (1, hidden_pad)
            ],
            out_specs=pl.BlockSpec((rows, hidden_pad), lambda b: (b, 0)),
            scratch_shapes=[
                pltpu.VMEM((3 * num_heads, rows, hd_pad), compute_dtype),  # QKV
                pltpu.VMEM((rows, hidden_pad), jnp.float32),               # out acc
            ],
        ),
        compiler_params=pltpu.CompilerParams(
            dimension_semantics=("parallel",),
            vmem_limit_bytes=vmem_limit),
    )(x2, mrow, mcol, wqkv, bqkv, wo, bo)

    # Drop the lane padding and restore (B, S, hidden).
    return out2.reshape(B, S, hidden_pad)[..., :hidden]


def _reference_forward(x, mask, params, *, num_heads):
    """Pure-JAX reference mirroring the PyTorch forward (f32)."""
    B, S, hidden = x.shape
    qkv_dim = params["wq"].shape[1]
    head_dim = qkv_dim // num_heads

    def lin(t, w, b):
        return t @ w + b[0]

    def split_heads(t):
        return t.reshape(B, S, num_heads, head_dim).transpose(0, 2, 1, 3)

    q = split_heads(lin(x, params["wq"], params["bq"])) * (1.0 / math.sqrt(qkv_dim))
    k = split_heads(lin(x, params["wk"], params["bk"]))
    v = split_heads(lin(x, params["wv"], params["bv"]))

    qk = jnp.einsum('bhqd,bhkd->bhqk', q, k)
    sm_mask = mask * jnp.swapaxes(mask, -1, -2)          # (B, S, S)
    sm_mask = (1.0 - sm_mask) * (-1000000.0)
    qk = qk + sm_mask[:, None, :, :]
    qk = jax.nn.softmax(qk, axis=-1)
    out = jnp.einsum('bhqk,bhkd->bhqd', qk, v)
    out = out.transpose(0, 2, 1, 3).reshape(B, S, qkv_dim)
    return lin(out, params["wo"], params["bo"])


def init_params(key, hidden_dim, qkv_dim):
    """Deterministic synthetic params. Weights (in_dim, out_dim); biases (1, out_dim)."""
    ks = jax.random.split(key, 8)
    def w(k, fan_in, fan_out):
        bound = 1.0 / math.sqrt(fan_in)
        return jax.random.uniform(k, (fan_in, fan_out), jnp.float32, -bound, bound)
    def b(k, fan_in, fan_out):
        bound = 1.0 / math.sqrt(fan_in)
        return jax.random.uniform(k, (1, fan_out), jnp.float32, -bound, bound)
    return {
        "wq": w(ks[0], hidden_dim, qkv_dim), "bq": b(ks[1], hidden_dim, qkv_dim),
        "wk": w(ks[2], hidden_dim, qkv_dim), "bk": b(ks[3], hidden_dim, qkv_dim),
        "wv": w(ks[4], hidden_dim, qkv_dim), "bv": b(ks[5], hidden_dim, qkv_dim),
        "wo": w(ks[6], qkv_dim, hidden_dim), "bo": b(ks[7], qkv_dim, hidden_dim),
    }


if __name__ == "__main__":
    B, S = 4, 8
    hidden_dim, qkv_dim, num_heads = 32, 32, 4
    # dropout_rate = 0.1 -> eval mode: dropout is identity in this forward pass.

    key = jax.random.PRNGKey(0)
    kx, kp = jax.random.split(key)
    x = jax.random.normal(kx, (B, S, hidden_dim), jnp.float32)

    # mask: (B, S, 1); some trailing positions masked out on two batch elements.
    mask = jnp.ones((B, S, 1), jnp.float32)
    mask = mask.at[1, S - 3:, 0].set(0.0)
    mask = mask.at[3, S - 5:, 0].set(0.0)

    params = init_params(kp, hidden_dim, qkv_dim)
    ref = _reference_forward(x, mask, params, num_heads=num_heads)

    # batch_block=1 -> grid=(4,); batch_block=2 -> grid=(2,) with 2 batch elems
    # per step (both >= 2 grid steps, so both v7x TensorCores stay busy).
    for bb in (1, 2):
        out = tattention_forward(x, mask, params, num_heads=num_heads,
                                 batch_block=bb, compute_dtype=jnp.bfloat16)
        out = jax.block_until_ready(out)
        assert out.shape == (B, S, hidden_dim)
        err = float(jnp.max(jnp.abs(out - ref)))
        # bf16 MXU operands + approx-reciprocal softmax: loosened tolerance.
        assert err < 5e-2, f"mismatch vs pure-JAX reference (batch_block={bb}, err={err})"

    print("KERNEL_OK")
</pallas_src>

<mosaic_0001>
module attributes {stable_mosaic.version = 11 : i64} {
  func.func @_tattention_kernel(%arg0: i32, %arg1: memref<8x32xbf16, #tpu.memory_space<vmem>>, %arg2: memref<1x8x1xf32, #tpu.memory_space<vmem>>, %arg3: memref<1x1x8xf32, #tpu.memory_space<vmem>>, %arg4: memref<12x32x128xbf16, #tpu.memory_space<vmem>>, %arg5: memref<12x1x128xf32, #tpu.memory_space<vmem>>, %arg6: memref<4x128x128xbf16, #tpu.memory_space<vmem>>, %arg7: memref<1x128xf32, #tpu.memory_space<vmem>>, %arg8: memref<8x128xf32, #tpu.memory_space<vmem>>, %arg9: memref<12x8x128xbf16, #tpu.memory_space<vmem>>, %arg10: memref<8x128xf32, #tpu.memory_space<vmem>>) attributes {dimension_semantics = [#tpu.dimension_semantics<parallel>], iteration_bounds = array<i64: 4>, scalar_prefetch = 0 : i64, scratch_operands = 2 : i64, tpu.core_type = #tpu.core_type<tc>, window_params = [{transform_indices = @transform_0, window_bounds = array<i64: 8, 32>}, {transform_indices = @transform_1, window_bounds = array<i64: 1, 8, 1>}, {transform_indices = @transform_2, window_bounds = array<i64: 1, 1, 8>}, {pipeline_mode = #tpu.pipeline_mode<synchronous>, transform_indices = @transform_3, window_bounds = array<i64: 12, 32, 128>}, {pipeline_mode = #tpu.pipeline_mode<synchronous>, transform_indices = @transform_4, window_bounds = array<i64: 12, 1, 128>}, {pipeline_mode = #tpu.pipeline_mode<synchronous>, transform_indices = @transform_5, window_bounds = array<i64: 4, 128, 128>}, {pipeline_mode = #tpu.pipeline_mode<synchronous>, transform_indices = @transform_6, window_bounds = array<i64: 1, 128>}, {transform_indices = @transform_7, window_bounds = array<i64: 8, 128>}]} {
    %c0_i32 = arith.constant 0 : i32
    %c0 = arith.constant 0 : index
    %c0_0 = arith.constant 0 : index
    %0 = vector.load %arg1[%c0, %c0_0] : memref<8x32xbf16, #tpu.memory_space<vmem>>, vector<8x32xbf16>
    %1 = arith.index_cast %c0_i32 : i32 to index
    %c0_1 = arith.constant 0 : index
    %c0_2 = arith.constant 0 : index
    %2 = vector.load %arg4[%1, %c0_1, %c0_2] : memref<12x32x128xbf16, #tpu.memory_space<vmem>>, vector<1x32x128xbf16>
    %3 = vector.shape_cast %2 : vector<1x32x128xbf16> to vector<32x128xbf16>
    %cst = arith.constant dense<0.000000e+00> : vector<8x128xf32>
    %4 = tpu.matmul %0, %3, %cst {dimension_numbers = #tpu.dot_dimension_numbers<[1], [0], [0], [1], [0, 0, 1, 1], [], []>} : vector<8x32xbf16>, vector<32x128xbf16>, vector<8x128xf32> -> vector<8x128xf32>
    %5 = arith.index_cast %c0_i32 : i32 to index
    %c0_3 = arith.constant 0 : index
    %c0_4 = arith.constant 0 : index
    %6 = vector.load %arg5[%5, %c0_3, %c0_4] : memref<12x1x128xf32, #tpu.memory_space<vmem>>, vector<1x1x128xf32>
    %7 = vector.shape_cast %6 : vector<1x1x128xf32> to vector<1x128xf32>
    %8 = vector.broadcast %7 : vector<1x128xf32> to vector<8x128xf32>
    %9 = arith.addf %4, %8 : vector<8x128xf32>
    %10 = arith.truncf %9 : vector<8x128xf32> to vector<8x128xbf16>
    %11 = arith.index_cast %c0_i32 : i32 to index
    %c0_5 = arith.constant 0 : index
    %c0_6 = arith.constant 0 : index
    %12 = vector.load %arg9[%11, %c0_5, %c0_6] : memref<12x8x128xbf16, #tpu.memory_space<vmem>>, vector<1x8x128xbf16>
    %13 = vector.shape_cast %12 : vector<1x8x128xbf16> to vector<8x128xbf16>
    %14 = vector.shape_cast %10 : vector<8x128xbf16> to vector<1x8x128xbf16>
    tpu.vector_store %arg9[%11, %c0_5, %c0_6], %14 {strides = array<i32>} : memref<12x8x128xbf16, #tpu.memory_space<vmem>>, vector<1x8x128xbf16>,
    %c1_i32 = arith.constant 1 : i32
    %c0_7 = arith.constant 0 : index
    %c0_8 = arith.constant 0 : index
    %15 = vector.load %arg1[%c0_7, %c0_8] : memref<8x32xbf16, #tpu.memory_space<vmem>>, vector<8x32xbf16>
    %16 = arith.index_cast %c1_i32 : i32 to index
    %c0_9 = arith.constant 0 : index
    %c0_10 = arith.constant 0 : index
    %17 = vector.load %arg4[%16, %c0_9, %c0_10] : memref<12x32x128xbf16, #tpu.memory_space<vmem>>, vector<1x32x128xbf16>
    %18 = vector.shape_cast %17 : vector<1x32x128xbf16> to vector<32x128xbf16>
    %cst_11 = arith.constant dense<0.000000e+00> : vector<8x128xf32>
    %19 = tpu.matmul %15, %18, %cst_11 {dimension_numbers = #tpu.dot_dimension_numbers<[1], [0], [0], [1], [0, 0, 1, 1], [], []>} : vector<8x32xbf16>, vector<32x128xbf16>, vector<8x128xf32> -> vector<8x128xf32>
    %20 = arith.index_cast %c1_i32 : i32 to index
    %c0_12 = arith.constant 0 : index
    %c0_13 = arith.constant 0 : index
    %21 = vector.load %arg5[%20, %c0_12, %c0_13] : memref<12x1x128xf32, #tpu.memory_space<vmem>>, vector<1x1x128xf32>
    %22 = vector.shape_cast %21 : vector<1x1x128xf32> to vector<1x128xf32>
    %23 = vector.broadcast %22 : vector<1x128xf32> to vector<8x128xf32>
    %24 = arith.addf %19, %23 : vector<8x128xf32>
    %25 = arith.truncf %24 : vector<8x128xf32> to vector<8x128xbf16>
    %26 = arith.index_cast %c1_i32 : i32 to index
    %c0_14 = arith.constant 0 : index
    %c0_15 = arith.constant 0 : index
    %27 = vector.load %arg9[%26, %c0_14, %c0_15] : memref<12x8x128xbf16, #tpu.memory_space<vmem>>, vector<1x8x128xbf16>
    %28 = vector.shape_cast %27 : vector<1x8x128xbf16> to vector<8x128xbf16>
    %29 = vector.shape_cast %25 : vector<8x128xbf16> to vector<1x8x128xbf16>
    tpu.vector_store %arg9[%26, %c0_14, %c0_15], %29 {strides = array<i32>} : memref<12x8x128xbf16, #tpu.memory_space<vmem>>, vector<1x8x128xbf16>,
    %c2_i32 = arith.constant 2 : i32
    %c0_16 = arith.constant 0 : index
    %c0_17 = arith.constant 0 : index
    %30 = vector.load %arg1[%c0_16, %c0_17] : memref<8x32xbf16, #tpu.memory_space<vmem>>, vector<8x32xbf16>
    %31 = arith.index_cast %c2_i32 : i32 to index
    %c0_18 = arith.constant 0 : index
    %c0_19 = arith.constant 0 : index
    %32 = vector.load %arg4[%31, %c0_18, %c0_19] : memref<12x32x128xbf16, #tpu.memory_space<vmem>>, vector<1x32x128xbf16>
    %33 = vector.shape_cast %32 : vector<1x32x128xbf16> to vector<32x128xbf16>
    %cst_20 = arith.constant dense<0.000000e+00> : vector<8x128xf32>
    %34 = tpu.matmul %30, %33, %cst_20 {dimension_numbers = #tpu.dot_dimension_numbers<[1], [0], [0], [1], [0, 0, 1, 1], [], []>} : vector<8x32xbf16>, vector<32x128xbf16>, vector<8x128xf32> -> vector<8x128xf32>
    %35 = arith.index_cast %c2_i32 : i32 to index
    %c0_21 = arith.constant 0 : index
    %c0_22 = arith.constant 0 : index
    %36 = vector.load %arg5[%35, %c0_21, %c0_22] : memref<12x1x128xf32, #tpu.memory_space<vmem>>, vector<1x1x128xf32>
    %37 = vector.shape_cast %36 : vector<1x1x128xf32> to vector<1x128xf32>
    %38 = vector.broadcast %37 : vector<1x128xf32> to vector<8x128xf32>
    %39 = arith.addf %34, %38 : vector<8x128xf32>
    %40 = arith.truncf %39 : vector<8x128xf32> to vector<8x128xbf16>
    %41 = arith.index_cast %c2_i32 : i32 to index
    %c0_23 = arith.constant 0 : index
    %c0_24 = arith.constant 0 : index
    %42 = vector.load %arg9[%41, %c0_23, %c0_24] : memref<12x8x128xbf16, #tpu.memory_space<vmem>>, vector<1x8x128xbf16>
    %43 = vector.shape_cast %42 : vector<1x8x128xbf16> to vector<8x128xbf16>
    %44 = vector.shape_cast %40 : vector<8x128xbf16> to vector<1x8x128xbf16>
    tpu.vector_store %arg9[%41, %c0_23, %c0_24], %44 {strides = array<i32>} : memref<12x8x128xbf16, #tpu.memory_space<vmem>>, vector<1x8x128xbf16>,
    %c3_i32 = arith.constant 3 : i32
    %c0_25 = arith.constant 0 : index
    %c0_26 = arith.constant 0 : index
    %45 = vector.load %arg1[%c0_25, %c0_26] : memref<8x32xbf16, #tpu.memory_space<vmem>>, vector<8x32xbf16>
    %46 = arith.index_cast %c3_i32 : i32 to index
    %c0_27 = arith.constant 0 : index
    %c0_28 = arith.constant 0 : index
    %47 = vector.load %arg4[%46, %c0_27, %c0_28] : memref<12x32x128xbf16, #tpu.memory_space<vmem>>, vector<1x32x128xbf16>
    %48 = vector.shape_cast %47 : vector<1x32x128xbf16> to vector<32x128xbf16>
    %cst_29 = arith.constant dense<0.000000e+00> : vector<8x128xf32>
    %49 = tpu.matmul %45, %48, %cst_29 {dimension_numbers = #tpu.dot_dimension_numbers<[1], [0], [0], [1], [0, 0, 1, 1], [], []>} : vector<8x32xbf16>, vector<32x128xbf16>, vector<8x128xf32> -> vector<8x128xf32>
    %50 = arith.index_cast %c3_i32 : i32 to index
    %c0_30 = arith.constant 0 : index
    %c0_31 = arith.constant 0 : index
    %51 = vector.load %arg5[%50, %c0_30, %c0_31] : memref<12x1x128xf32, #tpu.memory_space<vmem>>, vector<1x1x128xf32>
    %52 = vector.shape_cast %51 : vector<1x1x128xf32> to vector<1x128xf32>
    %53 = vector.broadcast %52 : vector<1x128xf32> to vector<8x128xf32>
    %54 = arith.addf %49, %53 : vector<8x128xf32>
    %55 = arith.truncf %54 : vector<8x128xf32> to vector<8x128xbf16>
    %56 = arith.index_cast %c3_i32 : i32 to index
    %c0_32 = arith.constant 0 : index
    %c0_33 = arith.constant 0 : index
    %57 = vector.load %arg9[%56, %c0_32, %c0_33] : memref<12x8x128xbf16, #tpu.memory_space<vmem>>, vector<1x8x128xbf16>
    %58 = vector.shape_cast %57 : vector<1x8x128xbf16> to vector<8x128xbf16>
    %59 = vector.shape_cast %55 : vector<8x128xbf16> to vector<1x8x128xbf16>
    tpu.vector_store %arg9[%56, %c0_32, %c0_33], %59 {strides = array<i32>} : memref<12x8x128xbf16, #tpu.memory_space<vmem>>, vector<1x8x128xbf16>,
    %c4_i32 = arith.constant 4 : i32
    %c0_34 = arith.constant 0 : index
    %c0_35 = arith.constant 0 : index
    %60 = vector.load %arg1[%c0_34, %c0_35] : memref<8x32xbf16, #tpu.memory_space<vmem>>, vector<8x32xbf16>
    %61 = arith.index_cast %c4_i32 : i32 to index
    %c0_36 = arith.constant 0 : index
    %c0_37 = arith.constant 0 : index
    %62 = vector.load %arg4[%61, %c0_36, %c0_37] : memref<12x32x128xbf16, #tpu.memory_space<vmem>>, vector<1x32x128xbf16>
    %63 = vector.shape_cast %62 : vector<1x32x128xbf16> to vector<32x128xbf16>
    %cst_38 = arith.constant dense<0.000000e+00> : vector<8x128xf32>
    %64 = tpu.matmul %60, %63, %cst_38 {dimension_numbers = #tpu.dot_dimension_numbers<[1], [0], [0], [1], [0, 0, 1, 1], [], []>} : vector<8x32xbf16>, vector<32x128xbf16>, vector<8x128xf32> -> vector<8x128xf32>
    %65 = arith.index_cast %c4_i32 : i32 to index
    %c0_39 = arith.constant 0 : index
    %c0_40 = arith.constant 0 : index
    %66 = vector.load %arg5[%65, %c0_39, %c0_40] : memref<12x1x128xf32, #tpu.memory_space<vmem>>, vector<1x1x128xf32>
    %67 = vector.shape_cast %66 : vector<1x1x128xf32> to vector<1x128xf32>
    %68 = vector.broadcast %67 : vector<1x128xf32> to vector<8x128xf32>
    %69 = arith.addf %64, %68 : vector<8x128xf32>
    %70 = arith.truncf %69 : vector<8x128xf32> to vector<8x128xbf16>
    %71 = arith.index_cast %c4_i32 : i32 to index
    %c0_41 = arith.constant 0 : index
    %c0_42 = arith.constant 0 : index
    %72 = vector.load %arg9[%71, %c0_41, %c0_42] : memref<12x8x128xbf16, #tpu.memory_space<vmem>>, vector<1x8x128xbf16>
    %73 = vector.shape_cast %72 : vector<1x8x128xbf16> to vector<8x128xbf16>
    %74 = vector.shape_cast %70 : vector<8x128xbf16> to vector<1x8x128xbf16>
    tpu.vector_store %arg9[%71, %c0_41, %c0_42], %74 {strides = array<i32>} : memref<12x8x128xbf16, #tpu.memory_space<vmem>>, vector<1x8x128xbf16>,
    %c5_i32 = arith.constant 5 : i32
    %c0_43 = arith.constant 0 : index
    %c0_44 = arith.constant 0 : index
    %75 = vector.load %arg1[%c0_43, %c0_44] : memref<8x32xbf16, #tpu.memory_space<vmem>>, vector<8x32xbf16>
    %76 = arith.index_cast %c5_i32 : i32 to index
    %c0_45 = arith.constant 0 : index
    %c0_46 = arith.constant 0 : index
    %77 = vector.load %arg4[%76, %c0_45, %c0_46] : memref<12x32x128xbf16, #tpu.memory_space<vmem>>, vector<1x32x128xbf16>
    %78 = vector.shape_cast %77 : vector<1x32x128xbf16> to vector<32x128xbf16>
    %cst_47 = arith.constant dense<0.000000e+00> : vector<8x128xf32>
    %79 = tpu.matmul %75, %78, %cst_47 {dimension_numbers = #tpu.dot_dimension_numbers<[1], [0], [0], [1], [0, 0, 1, 1], [], []>} : vector<8x32xbf16>, vector<32x128xbf16>, vector<8x128xf32> -> vector<8x128xf32>
    %80 = arith.index_cast %c5_i32 : i32 to index
    %c0_48 = arith.constant 0 : index
    %c0_49 = arith.constant 0 : index
    %81 = vector.load %arg5[%80, %c0_48, %c0_49] : memref<12x1x128xf32, #tpu.memory_space<vmem>>, vector<1x1x128xf32>
    %82 = vector.shape_cast %81 : vector<1x1x128xf32> to vector<1x128xf32>
    %83 = vector.broadcast %82 : vector<1x128xf32> to vector<8x128xf32>
    %84 = arith.addf %79, %83 : vector<8x128xf32>
    %85 = arith.truncf %84 : vector<8x128xf32> to vector<8x128xbf16>
    %86 = arith.index_cast %c5_i32 : i32 to index
    %c0_50 = arith.constant 0 : index
    %c0_51 = arith.constant 0 : index
    %87 = vector.load %arg9[%86, %c0_50, %c0_51] : memref<12x8x128xbf16, #tpu.memory_space<vmem>>, vector<1x8x128xbf16>
    %88 = vector.shape_cast %87 : vector<1x8x128xbf16> to vector<8x128xbf16>
    %89 = vector.shape_cast %85 : vector<8x128xbf16> to vector<1x8x128xbf16>
    tpu.vector_store %arg9[%86, %c0_50, %c0_51], %89 {strides = array<i32>} : memref<12x8x128xbf16, #tpu.memory_space<vmem>>, vector<1x8x128xbf16>,
    %c6_i32 = arith.constant 6 : i32
    %c0_52 = arith.constant 0 : index
    %c0_53 = arith.constant 0 : index
    %90 = vector.load %arg1[%c0_52, %c0_53] : memref<8x32xbf16, #tpu.memory_space<vmem>>, vector<8x32xbf16>
    %91 = arith.index_cast %c6_i32 : i32 to index
    %c0_54 = arith.constant 0 : index
    %c0_55 = arith.constant 0 : index
    %92 = vector.load %arg4[%91, %c0_54, %c0_55] : memref<12x32x128xbf16, #tpu.memory_space<vmem>>, vector<1x32x128xbf16>
    %93 = vector.shape_cast %92 : vector<1x32x128xbf16> to vector<32x128xbf16>
    %cst_56 = arith.constant dense<0.000000e+00> : vector<8x128xf32>
    %94 = tpu.matmul %90, %93, %cst_56 {dimension_numbers = #tpu.dot_dimension_numbers<[1], [0], [0], [1], [0, 0, 1, 1], [], []>} : vector<8x32xbf16>, vector<32x128xbf16>, vector<8x128xf32> -> vector<8x128xf32>
    %95 = arith.index_cast %c6_i32 : i32 to index
    %c0_57 = arith.constant 0 : index
    %c0_58 = arith.constant 0 : index
    %96 = vector.load %arg5[%95, %c0_57, %c0_58] : memref<12x1x128xf32, #tpu.memory_space<vmem>>, vector<1x1x128xf32>
    %97 = vector.shape_cast %96 : vector<1x1x128xf32> to vector<1x128xf32>
    %98 = vector.broadcast %97 : vector<1x128xf32> to vector<8x128xf32>
    %99 = arith.addf %94, %98 : vector<8x128xf32>
    %100 = arith.truncf %99 : vector<8x128xf32> to vector<8x128xbf16>
    %101 = arith.index_cast %c6_i32 : i32 to index
    %c0_59 = arith.constant 0 : index
    %c0_60 = arith.constant 0 : index
    %102 = vector.load %arg9[%101, %c0_59, %c0_60] : memref<12x8x128xbf16, #tpu.memory_space<vmem>>, vector<1x8x128xbf16>
    %103 = vector.shape_cast %102 : vector<1x8x128xbf16> to vector<8x128xbf16>
    %104 = vector.shape_cast %100 : vector<8x128xbf16> to vector<1x8x128xbf16>
    tpu.vector_store %arg9[%101, %c0_59, %c0_60], %104 {strides = array<i32>} : memref<12x8x128xbf16, #tpu.memory_space<vmem>>, vector<1x8x128xbf16>,
    %c7_i32 = arith.constant 7 : i32
    %c0_61 = arith.constant 0 : index
    %c0_62 = arith.constant 0 : index
    %105 = vector.load %arg1[%c0_61, %c0_62] : memref<8x32xbf16, #tpu.memory_space<vmem>>, vector<8x32xbf16>
    %106 = arith.index_cast %c7_i32 : i32 to index
    %c0_63 = arith.constant 0 : index
    %c0_64 = arith.constant 0 : index
    %107 = vector.load %arg4[%106, %c0_63, %c0_64] : memref<12x32x128xbf16, #tpu.memory_space<vmem>>, vector<1x32x128xbf16>
    %108 = vector.shape_cast %107 : vector<1x32x128xbf16> to vector<32x128xbf16>
    %cst_65 = arith.constant dense<0.000000e+00> : vector<8x128xf32>
    %109 = tpu.matmul %105, %108, %cst_65 {dimension_numbers = #tpu.dot_dimension_numbers<[1], [0], [0], [1], [0, 0, 1, 1], [], []>} : vector<8x32xbf16>, vector<32x128xbf16>, vector<8x128xf32> -> vector<8x128xf32>
    %110 = arith.index_cast %c7_i32 : i32 to index
    %c0_66 = arith.constant 0 : index
    %c0_67 = arith.constant 0 : index
    %111 = vector.load %arg5[%110, %c0_66, %c0_67] : memref<12x1x128xf32, #tpu.memory_space<vmem>>, vector<1x1x128xf32>
    %112 = vector.shape_cast %111 : vector<1x1x128xf32> to vector<1x128xf32>
    %113 = vector.broadcast %112 : vector<1x128xf32> to vector<8x128xf32>
    %114 = arith.addf %109, %113 : vector<8x128xf32>
    %115 = arith.truncf %114 : vector<8x128xf32> to vector<8x128xbf16>
    %116 = arith.index_cast %c7_i32 : i32 to index
    %c0_68 = arith.constant 0 : index
    %c0_69 = arith.constant 0 : index
    %117 = vector.load %arg9[%116, %c0_68, %c0_69] : memref<12x8x128xbf16, #tpu.memory_space<vmem>>, vector<1x8x128xbf16>
    %118 = vector.shape_cast %117 : vector<1x8x128xbf16> to vector<8x128xbf16>
    %119 = vector.shape_cast %115 : vector<8x128xbf16> to vector<1x8x128xbf16>
    tpu.vector_store %arg9[%116, %c0_68, %c0_69], %119 {strides = array<i32>} : memref<12x8x128xbf16, #tpu.memory_space<vmem>>, vector<1x8x128xbf16>,
    %c8_i32 = arith.constant 8 : i32
    %c0_70 = arith.constant 0 : index
    %c0_71 = arith.constant 0 : index
    %120 = vector.load %arg1[%c0_70, %c0_71] : memref<8x32xbf16, #tpu.memory_space<vmem>>, vector<8x32xbf16>
    %121 = arith.index_cast %c8_i32 : i32 to index
    %c0_72 = arith.constant 0 : index
    %c0_73 = arith.constant 0 : index
    %122 = vector.load %arg4[%121, %c0_72, %c0_73] : memref<12x32x128xbf16, #tpu.memory_space<vmem>>, vector<1x32x128xbf16>
    %123 = vector.shape_cast %122 : vector<1x32x128xbf16> to vector<32x128xbf16>
    %cst_74 = arith.constant dense<0.000000e+00> : vector<8x128xf32>
    %124 = tpu.matmul %120, %123, %cst_74 {dimension_numbers = #tpu.dot_dimension_numbers<[1], [0], [0], [1], [0, 0, 1, 1], [], []>} : vector<8x32xbf16>, vector<32x128xbf16>, vector<8x128xf32> -> vector<8x128xf32>
    %125 = arith.index_cast %c8_i32 : i32 to index
    %c0_75 = arith.constant 0 : index
    %c0_76 = arith.constant 0 : index
    %126 = vector.load %arg5[%125, %c0_75, %c0_76] : memref<12x1x128xf32, #tpu.memory_space<vmem>>, vector<1x1x128xf32>
    %127 = vector.shape_cast %126 : vector<1x1x128xf32> to vector<1x128xf32>
    %128 = vector.broadcast %127 : vector<1x128xf32> to vector<8x128xf32>
    %129 = arith.addf %124, %128 : vector<8x128xf32>
    %130 = arith.truncf %129 : vector<8x128xf32> to vector<8x128xbf16>
    %131 = arith.index_cast %c8_i32 : i32 to index
    %c0_77 = arith.constant 0 : index
    %c0_78 = arith.constant 0 : index
    %132 = vector.load %arg9[%131, %c0_77, %c0_78] : memref<12x8x128xbf16, #tpu.memory_space<vmem>>, vector<1x8x128xbf16>
    %133 = vector.shape_cast %132 : vector<1x8x128xbf16> to vector<8x128xbf16>
    %134 = vector.shape_cast %130 : vector<8x128xbf16> to vector<1x8x128xbf16>
    tpu.vector_store %arg9[%131, %c0_77, %c0_78], %134 {strides = array<i32>} : memref<12x8x128xbf16, #tpu.memory_space<vmem>>, vector<1x8x128xbf16>,
    %c9_i32 = arith.constant 9 : i32
    %c0_79 = arith.constant 0 : index
    %c0_80 = arith.constant 0 : index
    %135 = vector.load %arg1[%c0_79, %c0_80] : memref<8x32xbf16, #tpu.memory_space<vmem>>, vector<8x32xbf16>
    %136 = arith.index_cast %c9_i32 : i32 to index
    %c0_81 = arith.constant 0 : index
    %c0_82 = arith.constant 0 : index
    %137 = vector.load %arg4[%136, %c0_81, %c0_82] : memref<12x32x128xbf16, #tpu.memory_space<vmem>>, vector<1x32x128xbf16>
    %138 = vector.shape_cast %137 : vector<1x32x128xbf16> to vector<32x128xbf16>
    %cst_83 = arith.constant dense<0.000000e+00> : vector<8x128xf32>
    %139 = tpu.matmul %135, %138, %cst_83 {dimension_numbers = #tpu.dot_dimension_numbers<[1], [0], [0], [1], [0, 0, 1, 1], [], []>} : vector<8x32xbf16>, vector<32x128xbf16>, vector<8x128xf32> -> vector<8x128xf32>
    %140 = arith.index_cast %c9_i32 : i32 to index
    %c0_84 = arith.constant 0 : index
    %c0_85 = arith.constant 0 : index
    %141 = vector.load %arg5[%140, %c0_84, %c0_85] : memref<12x1x128xf32, #tpu.memory_space<vmem>>, vector<1x1x128xf32>
    %142 = vector.shape_cast %141 : vector<1x1x128xf32> to vector<1x128xf32>
    %143 = vector.broadcast %142 : vector<1x128xf32> to vector<8x128xf32>
    %144 = arith.addf %139, %143 : vector<8x128xf32>
    %145 = arith.truncf %144 : vector<8x128xf32> to vector<8x128xbf16>
    %146 = arith.index_cast %c9_i32 : i32 to index
    %c0_86 = arith.constant 0 : index
    %c0_87 = arith.constant 0 : index
    %147 = vector.load %arg9[%146, %c0_86, %c0_87] : memref<12x8x128xbf16, #tpu.memory_space<vmem>>, vector<1x8x128xbf16>
    %148 = vector.shape_cast %147 : vector<1x8x128xbf16> to vector<8x128xbf16>
    %149 = vector.shape_cast %145 : vector<8x128xbf16> to vector<1x8x128xbf16>
    tpu.vector_store %arg9[%146, %c0_86, %c0_87], %149 {strides = array<i32>} : memref<12x8x128xbf16, #tpu.memory_space<vmem>>, vector<1x8x128xbf16>,
    %c10_i32 = arith.constant 10 : i32
    %c0_88 = arith.constant 0 : index
    %c0_89 = arith.constant 0 : index
    %150 = vector.load %arg1[%c0_88, %c0_89] : memref<8x32xbf16, #tpu.memory_space<vmem>>, vector<8x32xbf16>
    %151 = arith.index_cast %c10_i32 : i32 to index
    %c0_90 = arith.constant 0 : index
    %c0_91 = arith.constant 0 : index
    %152 = vector.load %arg4[%151, %c0_90, %c0_91] : memref<12x32x128xbf16, #tpu.memory_space<vmem>>, vector<1x32x128xbf16>
    %153 = vector.shape_cast %152 : vector<1x32x128xbf16> to vector<32x128xbf16>
    %cst_92 = arith.constant dense<0.000000e+00> : vector<8x128xf32>
    %154 = tpu.matmul %150, %153, %cst_92 {dimension_numbers = #tpu.dot_dimension_numbers<[1], [0], [0], [1], [0, 0, 1, 1], [], []>} : vector<8x32xbf16>, vector<32x128xbf16>, vector<8x128xf32> -> vector<8x128xf32>
    %155 = arith.index_cast %c10_i32 : i32 to index
    %c0_93 = arith.constant 0 : index
    %c0_94 = arith.constant 0 : index
    %156 = vector.load %arg5[%155, %c0_93, %c0_94] : memref<12x1x128xf32, #tpu.memory_space<vmem>>, vector<1x1x128xf32>
    %157 = vector.shape_cast %156 : vector<1x1x128xf32> to vector<1x128xf32>
    %158 = vector.broadcast %157 : vector<1x128xf32> to vector<8x128xf32>
    %159 = arith.addf %154, %158 : vector<8x128xf32>
    %160 = arith.truncf %159 : vector<8x128xf32> to vector<8x128xbf16>
    %161 = arith.index_cast %c10_i32 : i32 to index
    %c0_95 = arith.constant 0 : index
    %c0_96 = arith.constant 0 : index
    %162 = vector.load %arg9[%161, %c0_95, %c0_96] : memref<12x8x128xbf16, #tpu.memory_space<vmem>>, vector<1x8x128xbf16>
    %163 = vector.shape_cast %162 : vector<1x8x128xbf16> to vector<8x128xbf16>
    %164 = vector.shape_cast %160 : vector<8x128xbf16> to vector<1x8x128xbf16>
    tpu.vector_store %arg9[%161, %c0_95, %c0_96], %164 {strides = array<i32>} : memref<12x8x128xbf16, #tpu.memory_space<vmem>>, vector<1x8x128xbf16>,
    %c11_i32 = arith.constant 11 : i32
    %c0_97 = arith.constant 0 : index
    %c0_98 = arith.constant 0 : index
    %165 = vector.load %arg1[%c0_97, %c0_98] : memref<8x32xbf16, #tpu.memory_space<vmem>>, vector<8x32xbf16>
    %166 = arith.index_cast %c11_i32 : i32 to index
    %c0_99 = arith.constant 0 : index
    %c0_100 = arith.constant 0 : index
    %167 = vector.load %arg4[%166, %c0_99, %c0_100] : memref<12x32x128xbf16, #tpu.memory_space<vmem>>, vector<1x32x128xbf16>
    %168 = vector.shape_cast %167 : vector<1x32x128xbf16> to vector<32x128xbf16>
    %cst_101 = arith.constant dense<0.000000e+00> : vector<8x128xf32>
    %169 = tpu.matmul %165, %168, %cst_101 {dimension_numbers = #tpu.dot_dimension_numbers<[1], [0], [0], [1], [0, 0, 1, 1], [], []>} : vector<8x32xbf16>, vector<32x128xbf16>, vector<8x128xf32> -> vector<8x128xf32>
    %170 = arith.index_cast %c11_i32 : i32 to index
    %c0_102 = arith.constant 0 : index
    %c0_103 = arith.constant 0 : index
    %171 = vector.load %arg5[%170, %c0_102, %c0_103] : memref<12x1x128xf32, #tpu.memory_space<vmem>>, vector<1x1x128xf32>
    %172 = vector.shape_cast %171 : vector<1x1x128xf32> to vector<1x128xf32>
    %173 = vector.broadcast %172 : vector<1x128xf32> to vector<8x128xf32>
    %174 = arith.addf %169, %173 : vector<8x128xf32>
    %175 = arith.truncf %174 : vector<8x128xf32> to vector<8x128xbf16>
    %176 = arith.index_cast %c11_i32 : i32 to index
    %c0_104 = arith.constant 0 : index
    %c0_105 = arith.constant 0 : index
    %177 = vector.load %arg9[%176, %c0_104, %c0_105] : memref<12x8x128xbf16, #tpu.memory_space<vmem>>, vector<1x8x128xbf16>
    %178 = vector.shape_cast %177 : vector<1x8x128xbf16> to vector<8x128xbf16>
    %179 = vector.shape_cast %175 : vector<8x128xbf16> to vector<1x8x128xbf16>
    tpu.vector_store %arg9[%176, %c0_104, %c0_105], %179 {strides = array<i32>} : memref<12x8x128xbf16, #tpu.memory_space<vmem>>, vector<1x8x128xbf16>,
    %c12_i32 = arith.constant 12 : i32
    %cst_106 = arith.constant 0.000000e+00 : f32
    %180 = vector.broadcast %cst_106 : f32 to vector<8x128xf32>
    %c0_107 = arith.constant 0 : index
    %c0_108 = arith.constant 0 : index
    %181 = vector.load %arg10[%c0_107, %c0_108] : memref<8x128xf32, #tpu.memory_space<vmem>>, vector<8x128xf32>
    tpu.vector_store %arg10[%c0_107, %c0_108], %180 {strides = array<i32>} : memref<8x128xf32, #tpu.memory_space<vmem>>, vector<8x128xf32>,
    %c0_i32_109 = arith.constant 0 : i32
    %182 = arith.index_cast %c0_i32_109 : i32 to index
    %c0_110 = arith.constant 0 : index
    %c0_111 = arith.constant 0 : index
    %183 = vector.load %arg2[%182, %c0_110, %c0_111] : memref<1x8x1xf32, #tpu.memory_space<vmem>>, vector<1x8x1xf32>
    %184 = vector.shape_cast %183 : vector<1x8x1xf32> to vector<8x1xf32>
    %185 = arith.index_cast %c0_i32_109 : i32 to index
    %c0_112 = arith.constant 0 : index
    %c0_113 = arith.constant 0 : index
    %186 = vector.load %arg3[%185, %c0_112, %c0_113] : memref<1x1x8xf32, #tpu.memory_space<vmem>>, vector<1x1x8xf32>
    %187 = vector.shape_cast %186 : vector<1x1x8xf32> to vector<1x8xf32>
    %188 = vector.broadcast %184 : vector<8x1xf32> to vector<8x8xf32>
    %189 = vector.broadcast %187 : vector<1x8xf32> to vector<8x8xf32>
    %190 = arith.mulf %188, %189 : vector<8x8xf32>
    %cst_114 = arith.constant 1.000000e+00 : f32
    %191 = vector.broadcast %cst_114 : f32 to vector<8x8xf32>
    %192 = arith.subf %191, %190 : vector<8x8xf32>
    %cst_115 = arith.constant -1.000000e+06 : f32
    %193 = vector.broadcast %cst_115 : f32 to vector<8x8xf32>
    %194 = arith.mulf %192, %193 : vector<8x8xf32>
    %c0_i32_116 = arith.constant 0 : i32
    %195 = arith.index_cast %c0_i32_116 : i32 to index
    %c0_117 = arith.constant 0 : index
    %c0_118 = arith.constant 0 : index
    %196 = vector.load %arg9[%195, %c0_117, %c0_118] : memref<12x8x128xbf16, #tpu.memory_space<vmem>>, vector<1x8x128xbf16>
    %197 = vector.shape_cast %196 : vector<1x8x128xbf16> to vector<8x128xbf16>
    %c4_i32_119 = arith.constant 4 : i32
    %198 = arith.addi %c4_i32_119, %c0_i32_116 : i32
    %199 = arith.index_cast %198 : i32 to index
    %c0_120 = arith.constant 0 : index
    %c0_121 = arith.constant 0 : index
    %200 = vector.load %arg9[%199, %c0_120, %c0_121] : memref<12x8x128xbf16, #tpu.memory_space<vmem>>, vector<1x8x128xbf16>
    %201 = vector.shape_cast %200 : vector<1x8x128xbf16> to vector<8x128xbf16>
    %c8_i32_122 = arith.constant 8 : i32
    %202 = arith.addi %c8_i32_122, %c0_i32_116 : i32
    %203 = arith.index_cast %202 : i32 to index
    %c0_123 = arith.constant 0 : index
    %c0_124 = arith.constant 0 : index
    %204 = vector.load %arg9[%203, %c0_123, %c0_124] : memref<12x8x128xbf16, #tpu.memory_space<vmem>>, vector<1x8x128xbf16>
    %205 = vector.shape_cast %204 : vector<1x8x128xbf16> to vector<8x128xbf16>
    %cst_125 = arith.constant dense<0.000000e+00> : vector<8x8xf32>
    %206 = tpu.matmul %197, %201, %cst_125 {dimension_numbers = #tpu.dot_dimension_numbers<[1], [1], [0], [0], [0, 0, 1, 0], [], []>} : vector<8x128xbf16>, vector<8x128xbf16>, vector<8x8xf32> -> vector<8x8xf32>
    %207 = arith.addf %206, %194 : vector<8x8xf32>
    %cst_126 = arith.constant dense<0xFF800000> : vector<8xf32>
    %208 = vector.multi_reduction <maximumf>, %207, %cst_126 [1] : vector<8x8xf32> to vector<8xf32>
    %209 = vector.shape_cast %208 : vector<8xf32> to vector<8x1xf32>
    %210 = vector.broadcast %209 : vector<8x1xf32> to vector<8x8xf32>
    %211 = arith.subf %207, %210 : vector<8x8xf32>
    %212 = math.exp %211 : vector<8x8xf32>
    %cst_127 = arith.constant dense<0.000000e+00> : vector<8xf32>
    %213 = vector.multi_reduction <add>, %212, %cst_127 [1] : vector<8x8xf32> to vector<8xf32>
    %214 = vector.shape_cast %213 : vector<8xf32> to vector<8x1xf32>
    %215 = tpu.reciprocal %214 {approx = true} : vector<8x1xf32> -> vector<8x1xf32>
    %216 = vector.broadcast %215 : vector<8x1xf32> to vector<8x8xf32>
    %217 = arith.mulf %212, %216 : vector<8x8xf32>
    %218 = arith.truncf %217 : vector<8x8xf32> to vector<8x8xbf16>
    %cst_128 = arith.constant dense<0.000000e+00> : vector<8x128xf32>
    %219 = tpu.matmul %218, %205, %cst_128 {dimension_numbers = #tpu.dot_dimension_numbers<[1], [0], [0], [1], [0, 0, 1, 1], [], []>} : vector<8x8xbf16>, vector<8x128xbf16>, vector<8x128xf32> -> vector<8x128xf32>
    %c0_129 = arith.constant 0 : index
    %c0_130 = arith.constant 0 : index
    %220 = vector.load %arg10[%c0_129, %c0_130] : memref<8x128xf32, #tpu.memory_space<vmem>>, vector<8x128xf32>
    %221 = arith.truncf %219 : vector<8x128xf32> to vector<8x128xbf16>
    %222 = arith.index_cast %c0_i32_116 : i32 to index
    %c0_131 = arith.constant 0 : index
    %c0_132 = arith.constant 0 : index
    %223 = vector.load %arg6[%222, %c0_131, %c0_132] : memref<4x128x128xbf16, #tpu.memory_space<vmem>>, vector<1x128x128xbf16>
    %224 = vector.shape_cast %223 : vector<1x128x128xbf16> to vector<128x128xbf16>
    %cst_133 = arith.constant dense<0.000000e+00> : vector<8x128xf32>
    %225 = tpu.matmul %221, %224, %cst_133 {dimension_numbers = #tpu.dot_dimension_numbers<[1], [0], [0], [1], [0, 0, 1, 1], [], []>} : vector<8x128xbf16>, vector<128x128xbf16>, vector<8x128xf32> -> vector<8x128xf32>
    %226 = arith.addf %220, %225 : vector<8x128xf32>
    %c0_134 = arith.constant 0 : index
    %c0_135 = arith.constant 0 : index
    %227 = vector.load %arg10[%c0_134, %c0_135] : memref<8x128xf32, #tpu.memory_space<vmem>>, vector<8x128xf32>
    tpu.vector_store %arg10[%c0_134, %c0_135], %226 {strides = array<i32>} : memref<8x128xf32, #tpu.memory_space<vmem>>, vector<8x128xf32>,
    %c1_i32_136 = arith.constant 1 : i32
    %228 = arith.index_cast %c1_i32_136 : i32 to index
    %c0_137 = arith.constant 0 : index
    %c0_138 = arith.constant 0 : index
    %229 = vector.load %arg9[%228, %c0_137, %c0_138] : memref<12x8x128xbf16, #tpu.memory_space<vmem>>, vector<1x8x128xbf16>
    %230 = vector.shape_cast %229 : vector<1x8x128xbf16> to vector<8x128xbf16>
    %c4_i32_139 = arith.constant 4 : i32
    %231 = arith.addi %c4_i32_139, %c1_i32_136 : i32
    %232 = arith.index_cast %231 : i32 to index
    %c0_140 = arith.constant 0 : index
    %c0_141 = arith.constant 0 : index
    %233 = vector.load %arg9[%232, %c0_140, %c0_141] : memref<12x8x128xbf16, #tpu.memory_space<vmem>>, vector<1x8x128xbf16>
    %234 = vector.shape_cast %233 : vector<1x8x128xbf16> to vector<8x128xbf16>
    %c8_i32_142 = arith.constant 8 : i32
    %235 = arith.addi %c8_i32_142, %c1_i32_136 : i32
    %236 = arith.index_cast %235 : i32 to index
    %c0_143 = arith.constant 0 : index
    %c0_144 = arith.constant 0 : index
    %237 = vector.load %arg9[%236, %c0_143, %c0_144] : memref<12x8x128xbf16, #tpu.memory_space<vmem>>, vector<1x8x128xbf16>
    %238 = vector.shape_cast %237 : vector<1x8x128xbf16> to vector<8x128xbf16>
    %cst_145 = arith.constant dense<0.000000e+00> : vector<8x8xf32>
    %239 = tpu.matmul %230, %234, %cst_145 {dimension_numbers = #tpu.dot_dimension_numbers<[1], [1], [0], [0], [0, 0, 1, 0], [], []>} : vector<8x128xbf16>, vector<8x128xbf16>, vector<8x8xf32> -> vector<8x8xf32>
    %240 = arith.addf %239, %194 : vector<8x8xf32>
    %cst_146 = arith.constant dense<0xFF800000> : vector<8xf32>
    %241 = vector.multi_reduction <maximumf>, %240, %cst_146 [1] : vector<8x8xf32> to vector<8xf32>
    %242 = vector.shape_cast %241 : vector<8xf32> to vector<8x1xf32>
    %243 = vector.broadcast %242 : vector<8x1xf32> to vector<8x8xf32>
    %244 = arith.subf %240, %243 : vector<8x8xf32>
    %245 = math.exp %244 : vector<8x8xf32>
    %cst_147 = arith.constant dense<0.000000e+00> : vector<8xf32>
    %246 = vector.multi_reduction <add>, %245, %cst_147 [1] : vector<8x8xf32> to vector<8xf32>
    %247 = vector.shape_cast %246 : vector<8xf32> to vector<8x1xf32>
    %248 = tpu.reciprocal %247 {approx = true} : vector<8x1xf32> -> vector<8x1xf32>
    %249 = vector.broadcast %248 : vector<8x1xf32> to vector<8x8xf32>
    %250 = arith.mulf %245, %249 : vector<8x8xf32>
    %251 = arith.truncf %250 : vector<8x8xf32> to vector<8x8xbf16>
    %cst_148 = arith.constant dense<0.000000e+00> : vector<8x128xf32>
    %252 = tpu.matmul %251, %238, %cst_148 {dimension_numbers = #tpu.dot_dimension_numbers<[1], [0], [0], [1], [0, 0, 1, 1], [], []>} : vector<8x8xbf16>, vector<8x128xbf16>, vector<8x128xf32> -> vector<8x128xf32>
    %c0_149 = arith.constant 0 : index
    %c0_150 = arith.constant 0 : index
    %253 = vector.load %arg10[%c0_149, %c0_150] : memref<8x128xf32, #tpu.memory_space<vmem>>, vector<8x128xf32>
    %254 = arith.truncf %252 : vector<8x128xf32> to vector<8x128xbf16>
    %255 = arith.index_cast %c1_i32_136 : i32 to index
    %c0_151 = arith.constant 0 : index
    %c0_152 = arith.constant 0 : index
    %256 = vector.load %arg6[%255, %c0_151, %c0_152] : memref<4x128x128xbf16, #tpu.memory_space<vmem>>, vector<1x128x128xbf16>
    %257 = vector.shape_cast %256 : vector<1x128x128xbf16> to vector<128x128xbf16>
    %cst_153 = arith.constant dense<0.000000e+00> : vector<8x128xf32>
    %258 = tpu.matmul %254, %257, %cst_153 {dimension_numbers = #tpu.dot_dimension_numbers<[1], [0], [0], [1], [0, 0, 1, 1], [], []>} : vector<8x128xbf16>, vector<128x128xbf16>, vector<8x128xf32> -> vector<8x128xf32>
    %259 = arith.addf %253, %258 : vector<8x128xf32>
    %c0_154 = arith.constant 0 : index
    %c0_155 = arith.constant 0 : index
    %260 = vector.load %arg10[%c0_154, %c0_155] : memref<8x128xf32, #tpu.memory_space<vmem>>, vector<8x128xf32>
    tpu.vector_store %arg10[%c0_154, %c0_155], %259 {strides = array<i32>} : memref<8x128xf32, #tpu.memory_space<vmem>>, vector<8x128xf32>,
    %c2_i32_156 = arith.constant 2 : i32
    %261 = arith.index_cast %c2_i32_156 : i32 to index
    %c0_157 = arith.constant 0 : index
    %c0_158 = arith.constant 0 : index
    %262 = vector.load %arg9[%261, %c0_157, %c0_158] : memref<12x8x128xbf16, #tpu.memory_space<vmem>>, vector<1x8x128xbf16>
    %263 = vector.shape_cast %262 : vector<1x8x128xbf16> to vector<8x128xbf16>
    %c4_i32_159 = arith.constant 4 : i32
    %264 = arith.addi %c4_i32_159, %c2_i32_156 : i32
    %265 = arith.index_cast %264 : i32 to index
    %c0_160 = arith.constant 0 : index
    %c0_161 = arith.constant 0 : index
    %266 = vector.load %arg9[%265, %c0_160, %c0_161] : memref<12x8x128xbf16, #tpu.memory_space<vmem>>, vector<1x8x128xbf16>
    %267 = vector.shape_cast %266 : vector<1x8x128xbf16> to vector<8x128xbf16>
    %c8_i32_162 = arith.constant 8 : i32
    %268 = arith.addi %c8_i32_162, %c2_i32_156 : i32
    %269 = arith.index_cast %268 : i32 to index
    %c0_163 = arith.constant 0 : index
    %c0_164 = arith.constant 0 : index
    %270 = vector.load %arg9[%269, %c0_163, %c0_164] : memref<12x8x128xbf16, #tpu.memory_space<vmem>>, vector<1x8x128xbf16>
    %271 = vector.shape_cast %270 : vector<1x8x128xbf16> to vector<8x128xbf16>
    %cst_165 = arith.constant dense<0.000000e+00> : vector<8x8xf32>
    %272 = tpu.matmul %263, %267, %cst_165 {dimension_numbers = #tpu.dot_dimension_numbers<[1], [1], [0], [0], [0, 0, 1, 0], [], []>} : vector<8x128xbf16>, vector<8x128xbf16>, vector<8x8xf32> -> vector<8x8xf32>
    %273 = arith.addf %272, %194 : vector<8x8xf32>
    %cst_166 = arith.constant dense<0xFF800000> : vector<8xf32>
    %274 = vector.multi_reduction <maximumf>, %273, %cst_166 [1] : vector<8x8xf32> to vector<8xf32>
    %275 = vector.shape_cast %274 : vector<8xf32> to vector<8x1xf32>
    %276 = vector.broadcast %275 : vector<8x1xf32> to vector<8x8xf32>
    %277 = arith.subf %273, %276 : vector<8x8xf32>
    %278 = math.exp %277 : vector<8x8xf32>
    %cst_167 = arith.constant dense<0.000000e+00> : vector<8xf32>
    %279 = vector.multi_reduction <add>, %278, %cst_167 [1] : vector<8x8xf32> to vector<8xf32>
    %280 = vector.shape_cast %279 : vector<8xf32> to vector<8x1xf32>
    %281 = tpu.reciprocal %280 {approx = true} : vector<8x1xf32> -> vector<8x1xf32>
    %282 = vector.broadcast %281 : vector<8x1xf32> to vector<8x8xf32>
    %283 = arith.mulf %278, %282 : vector<8x8xf32>
    %284 = arith.truncf %283 : vector<8x8xf32> to vector<8x8xbf16>
    %cst_168 = arith.constant dense<0.000000e+00> : vector<8x128xf32>
    %285 = tpu.matmul %284, %271, %cst_168 {dimension_numbers = #tpu.dot_dimension_numbers<[1], [0], [0], [1], [0, 0, 1, 1], [], []>} : vector<8x8xbf16>, vector<8x128xbf16>, vector<8x128xf32> -> vector<8x128xf32>
    %c0_169 = arith.constant 0 : index
    %c0_170 = arith.constant 0 : index
    %286 = vector.load %arg10[%c0_169, %c0_170] : memref<8x128xf32, #tpu.memory_space<vmem>>, vector<8x128xf32>
    %287 = arith.truncf %285 : vector<8x128xf32> to vector<8x128xbf16>
    %288 = arith.index_cast %c2_i32_156 : i32 to index
    %c0_171 = arith.constant 0 : index
    %c0_172 = arith.constant 0 : index
    %289 = vector.load %arg6[%288, %c0_171, %c0_172] : memref<4x128x128xbf16, #tpu.memory_space<vmem>>, vector<1x128x128xbf16>
    %290 = vector.shape_cast %289 : vector<1x128x128xbf16> to vector<128x128xbf16>
    %cst_173 = arith.constant dense<0.000000e+00> : vector<8x128xf32>
    %291 = tpu.matmul %287, %290, %cst_173 {dimension_numbers = #tpu.dot_dimension_numbers<[1], [0], [0], [1], [0, 0, 1, 1], [], []>} : vector<8x128xbf16>, vector<128x128xbf16>, vector<8x128xf32> -> vector<8x128xf32>
    %292 = arith.addf %286, %291 : vector<8x128xf32>
    %c0_174 = arith.constant 0 : index
    %c0_175 = arith.constant 0 : index
    %293 = vector.load %arg10[%c0_174, %c0_175] : memref<8x128xf32, #tpu.memory_space<vmem>>, vector<8x128xf32>
    tpu.vector_store %arg10[%c0_174, %c0_175], %292 {strides = array<i32>} : memref<8x128xf32, #tpu.memory_space<vmem>>, vector<8x128xf32>,
    %c3_i32_176 = arith.constant 3 : i32
    %294 = arith.index_cast %c3_i32_176 : i32 to index
    %c0_177 = arith.constant 0 : index
    %c0_178 = arith.constant 0 : index
    %295 = vector.load %arg9[%294, %c0_177, %c0_178] : memref<12x8x128xbf16, #tpu.memory_space<vmem>>, vector<1x8x128xbf16>
    %296 = vector.shape_cast %295 : vector<1x8x128xbf16> to vector<8x128xbf16>
    %c4_i32_179 = arith.constant 4 : i32
    %297 = arith.addi %c4_i32_179, %c3_i32_176 : i32
    %298 = arith.index_cast %297 : i32 to index
    %c0_180 = arith.constant 0 : index
    %c0_181 = arith.constant 0 : index
    %299 = vector.load %arg9[%298, %c0_180, %c0_181] : memref<12x8x128xbf16, #tpu.memory_space<vmem>>, vector<1x8x128xbf16>
    %300 = vector.shape_cast %299 : vector<1x8x128xbf16> to vector<8x128xbf16>
    %c8_i32_182 = arith.constant 8 : i32
    %301 = arith.addi %c8_i32_182, %c3_i32_176 : i32
    %302 = arith.index_cast %301 : i32 to index
    %c0_183 = arith.constant 0 : index
    %c0_184 = arith.constant 0 : index
    %303 = vector.load %arg9[%302, %c0_183, %c0_184] : memref<12x8x128xbf16, #tpu.memory_space<vmem>>, vector<1x8x128xbf16>
    %304 = vector.shape_cast %303 : vector<1x8x128xbf16> to vector<8x128xbf16>
    %cst_185 = arith.constant dense<0.000000e+00> : vector<8x8xf32>
    %305 = tpu.matmul %296, %300, %cst_185 {dimension_numbers = #tpu.dot_dimension_numbers<[1], [1], [0], [0], [0, 0, 1, 0], [], []>} : vector<8x128xbf16>, vector<8x128xbf16>, vector<8x8xf32> -> vector<8x8xf32>
    %306 = arith.addf %305, %194 : vector<8x8xf32>
    %cst_186 = arith.constant dense<0xFF800000> : vector<8xf32>
    %307 = vector.multi_reduction <maximumf>, %306, %cst_186 [1] : vector<8x8xf32> to vector<8xf32>
    %308 = vector.shape_cast %307 : vector<8xf32> to vector<8x1xf32>
    %309 = vector.broadcast %308 : vector<8x1xf32> to vector<8x8xf32>
    %310 = arith.subf %306, %309 : vector<8x8xf32>
    %311 = math.exp %310 : vector<8x8xf32>
    %cst_187 = arith.constant dense<0.000000e+00> : vector<8xf32>
    %312 = vector.multi_reduction <add>, %311, %cst_187 [1] : vector<8x8xf32> to vector<8xf32>
    %313 = vector.shape_cast %312 : vector<8xf32> to vector<8x1xf32>
    %314 = tpu.reciprocal %313 {approx = true} : vector<8x1xf32> -> vector<8x1xf32>
    %315 = vector.broadcast %314 : vector<8x1xf32> to vector<8x8xf32>
    %316 = arith.mulf %311, %315 : vector<8x8xf32>
    %317 = arith.truncf %316 : vector<8x8xf32> to vector<8x8xbf16>
    %cst_188 = arith.constant dense<0.000000e+00> : vector<8x128xf32>
    %318 = tpu.matmul %317, %304, %cst_188 {dimension_numbers = #tpu.dot_dimension_numbers<[1], [0], [0], [1], [0, 0, 1, 1], [], []>} : vector<8x8xbf16>, vector<8x128xbf16>, vector<8x128xf32> -> vector<8x128xf32>
    %c0_189 = arith.constant 0 : index
    %c0_190 = arith.constant 0 : index
    %319 = vector.load %arg10[%c0_189, %c0_190] : memref<8x128xf32, #tpu.memory_space<vmem>>, vector<8x128xf32>
    %320 = arith.truncf %318 : vector<8x128xf32> to vector<8x128xbf16>
    %321 = arith.index_cast %c3_i32_176 : i32 to index
    %c0_191 = arith.constant 0 : index
    %c0_192 = arith.constant 0 : index
    %322 = vector.load %arg6[%321, %c0_191, %c0_192] : memref<4x128x128xbf16, #tpu.memory_space<vmem>>, vector<1x128x128xbf16>
    %323 = vector.shape_cast %322 : vector<1x128x128xbf16> to vector<128x128xbf16>
    %cst_193 = arith.constant dense<0.000000e+00> : vector<8x128xf32>
    %324 = tpu.matmul %320, %323, %cst_193 {dimension_numbers = #tpu.dot_dimension_numbers<[1], [0], [0], [1], [0, 0, 1, 1], [], []>} : vector<8x128xbf16>, vector<128x128xbf16>, vector<8x128xf32> -> vector<8x128xf32>
    %325 = arith.addf %319, %324 : vector<8x128xf32>
    %c0_194 = arith.constant 0 : index
    %c0_195 = arith.constant 0 : index
    %326 = vector.load %arg10[%c0_194, %c0_195] : memref<8x128xf32, #tpu.memory_space<vmem>>, vector<8x128xf32>
    tpu.vector_store %arg10[%c0_194, %c0_195], %325 {strides = array<i32>} : memref<8x128xf32, #tpu.memory_space<vmem>>, vector<8x128xf32>,
    %c4_i32_196 = arith.constant 4 : i32
    %c1_i32_197 = arith.constant 1 : i32
    %c0_198 = arith.constant 0 : index
    %c0_199 = arith.constant 0 : index
    %327 = vector.load %arg10[%c0_198, %c0_199] : memref<8x128xf32, #tpu.memory_space<vmem>>, vector<8x128xf32>
    %c0_200 = arith.constant 0 : index
    %c0_201 = arith.constant 0 : index
    %328 = vector.load %arg7[%c0_200, %c0_201] : memref<1x128xf32, #tpu.memory_space<vmem>>, vector<1x128xf32>
    %329 = vector.broadcast %328 : vector<1x128xf32> to vector<8x128xf32>
    %330 = arith.addf %327, %329 : vector<8x128xf32>
    %c0_202 = arith.constant 0 : index
    %c0_203 = arith.constant 0 : index
    %331 = vector.load %arg8[%c0_202, %c0_203] : memref<8x128xf32, #tpu.memory_space<vmem>>, vector<8x128xf32>
    tpu.vector_store %arg8[%c0_202, %c0_203], %330 {strides = array<i32>} : memref<8x128xf32, #tpu.memory_space<vmem>>, vector<8x128xf32>,
    return
  }
  func.func @transform_0(%arg0: i32) -> (i32, i32) {
    %c0_i32 = arith.constant 0 : i32
    %c0_i32_0 = arith.constant 0 : i32
    return %arg0, %c0_i32 : i32, i32
  }
  func.func @transform_1(%arg0: i32) -> (i32, i32, i32) {
    %c0_i32 = arith.constant 0 : i32
    %c0_i32_0 = arith.constant 0 : i32
    %c0_i32_1 = arith.constant 0 : i32
    return %arg0, %c0_i32, %c0_i32_0 : i32, i32, i32
  }
  func.func @transform_2(%arg0: i32) -> (i32, i32, i32) {
    %c0_i32 = arith.constant 0 : i32
    %c0_i32_0 = arith.constant 0 : i32
    %c0_i32_1 = arith.constant 0 : i32
    return %arg0, %c0_i32, %c0_i32_0 : i32, i32, i32
  }
  func.func @transform_3(%arg0: i32) -> (i32, i32, i32) {
    %c0_i32 = arith.constant 0 : i32
    %c0_i32_0 = arith.constant 0 : i32
    %c0_i32_1 = arith.constant 0 : i32
    %c0_i32_2 = arith.constant 0 : i32
    return %c0_i32, %c0_i32_0, %c0_i32_1 : i32, i32, i32
  }
  func.func @transform_4(%arg0: i32) -> (i32, i32, i32) {
    %c0_i32 = arith.constant 0 : i32
    %c0_i32_0 = arith.constant 0 : i32
    %c0_i32_1 = arith.constant 0 : i32
    %c0_i32_2 = arith.constant 0 : i32
    return %c0_i32, %c0_i32_0, %c0_i32_1 : i32, i32, i32
  }
  func.func @transform_5(%arg0: i32) -> (i32, i32, i32) {
    %c0_i32 = arith.constant 0 : i32
    %c0_i32_0 = arith.constant 0 : i32
    %c0_i32_1 = arith.constant 0 : i32
    %c0_i32_2 = arith.constant 0 : i32
    return %c0_i32, %c0_i32_0, %c0_i32_1 : i32, i32, i32
  }
  func.func @transform_6(%arg0: i32) -> (i32, i32) {
    %c0_i32 = arith.constant 0 : i32
    %c0_i32_0 = arith.constant 0 : i32
    %c0_i32_1 = arith.constant 0 : i32
    return %c0_i32, %c0_i32_0 : i32, i32
  }
  func.func @transform_7(%arg0: i32) -> (i32, i32) {
    %c0_i32 = arith.constant 0 : i32
    %c0_i32_0 = arith.constant 0 : i32
    return %arg0, %c0_i32 : i32, i32
  }
}

</mosaic_0001>

<bundles_post_ra>
// kernel: tpu_custom_call.1
= control target key start
LH: loop header
LB: loop body
LE: loop exit
PB: predicated region body
PF: predicated region fallthrough
CT: control target
= control target key end

     0   :  { %12 = vsyncpa [#allocation5], 0  ;;  %s2302_s0 = inlined_call_operand.vmem [shape: bf16[32,32], index: 0, kind: input, shape index: {}]   ;;  %s2303_s1 = inlined_call_operand.vmem [shape: f32[4,8,1], index: 1, kind: input, shape index: {}]   ;;  %s2304_s2 = inlined_call_operand.vmem [shape: f32[4,1,8], index: 2, kind: input, shape index: {}]   ;;  %s2305_s3 = inlined_call_operand.hbm [shape: bf16[12,32,128], index: 3, kind: input, shape index: {}]   ;;  %s2306_s4 = inlined_call_operand.vmem [shape: f32[12,1,128], index: 4, kind: input, shape index: {}]   ;;  %s2307_s5 = inlined_call_operand.hbm [shape: bf16[4,128,128], index: 5, kind: input, shape index: {}]   ;;  %s2308_s6 = inlined_call_operand.vmem [shape: f32[1,128], index: 6, kind: input, shape index: {}]   ;;  %s2309_s7 = inlined_call_operand.hbm [shape: f32[32,128], index: 7, kind: output, shape index: {}]  }
   0x1   :  { %13 = vsyncpa [#allocation8], 0 }
   0x2   :  { %14 = vsyncpa [#allocation6], 0 }
   0x3   :  { %16 = vsyncpa [#allocation6 + $0x1], 0  ;;  %s2091_s24 = smov 0   ;;  %s2093_s25 = smov 0  }
   0x4   :  { %s2095_s26 = smov 0   ;;  %s2097_s27 = smov 0  }
   0x5 LB: > { %s2112_s28 = sadd.s32 4294967295, %s2044_s27   ;;  %s1498_s29 = sadd.s32 4294967294, %s2044_s27   ;;  %s2044_s27 = sphi %s2097_s27, %s2316_s27   ;;  %s2040_s26 = sphi %s2095_s26, %s2315_s26   ;;  %s2036_s25 = sphi %s2093_s25, %s2314_s25   ;;  %s2032_s24 = sphi %s2091_s24, %s2313_s24  }
   0x6   : > { %s2116_s30 = sadd.s32 1, %s2044_s27   ;;  %s191_s8 = sadd.s32 1, %s2040_s26 }
   0x7   : > { %s188_s9 = ssub.s32 %s2044_s27, %s2116_s30  ;;  %p201_p0 = scmp.ne.s32.totalorder %s2040_s26, %s2036_s25 }
   0x8   : > { %p189_p1 = scmp.eq.s32.totalorder %s188_s9, 0  ;;  %p202_p2 = scmp.eq.s32.totalorder %s2112_s28, 3 }
   0x9   : > { %p207_p3 = scmp.ne.s32.totalorder %s2036_s25, %s2032_s24  ;;  %p208_p4 = scmp.eq.s32.totalorder %s1498_s29, 3 }
   0xa   : > { %s2127_s10 = scalar_select %p189_p1, %s2040_s26, %s191_s8  }
   0xb   : > { %p2129_p5 = por %p202_p2, %p201_p0  ;;  %p2133_p6 = por %p208_p4, %p207_p3 }
   0xc   : > { %p1499_p7 = scmp.ge.s32.totalorder %s2044_s27, 1  ;;  %p215_p8 = scmp.lt.s32.totalorder %s2044_s27, 5 }
   0xd   : > { %p1841_p9 = scmp.eq.s32.totalorder %s2112_s28, 0  ;;  %s226_s16 = sshll.u32 %s2305_s3, 4  ;;  %s227_s16 = int_to_ptr.hbm [resolvable:$true] %s226_s16 }
   0xe   : > { %p2140_p10 = pnand %p1499_p7, %p215_p8  ;;  %s2046_s17 = smov [#allocation4]  }
   0xf   : > { %s228_s18 = sshll.u32 %s2046_s17, 4  ;;  %s243_s21 = sshll.u32 %s2307_s5, 4  ;;  %s229_s18 = int_to_ptr.vmem [resolvable:$true] %s228_s18  ;;  %s244_s21 = int_to_ptr.hbm [resolvable:$true] %s243_s21 }
  0x10   : > { %p1830_p11 = pneg %p2140_p10  ;;  %s2047_s22 = smov 64  }
  0x11   : > { %s2048_s23 = smov 4   ;;  %s2049_s29 = smov [#allocation7]  }
  0x12   : > { %p1831_p12 = pnand %p1841_p9, %p1830_p11  ;;  %s245_s8 = sshll.u32 %s2049_s29, 4  ;;  %s246_s8 = int_to_ptr.vmem [resolvable:$true] %s245_s8 }
  0x13   : > { %284 = sbr.rel (%p2140_p10) target bundleno = 872 (0x368), region = 48 }
  0x14   : > { %1833 = dma.hbm_to_vmem [thread:$0]  (!%p1831_p12), %s227_s16, 3072, %s229_s18, [#allocation5], %s2047_s22, %s2047_s22, %s2048_s23  }
  0x15   : > { %1836 = dma.hbm_to_vmem [thread:$0]  (!%p1831_p12), %s244_s21, 4096, %s246_s8, [#allocation8], %s2047_s22, %s2047_s22, %s2048_s23  }
  0x18   : > { %2019 = dma.done.wait (%p1841_p9), [#allocation5], 3072  }
  0x19   : > { %2021 = vsyncadd (%p1841_p9), [#allocation5], 4294964224 }
  0x1a   : > { %2023 = dma.done.wait (%p1841_p9), [#allocation8], 4096  }
  0x1b   : > { %2025 = vsyncadd (%p1841_p9), [#allocation8], 4294963200  ;;  %p328_p13 = scmp.lt.s32.totalorder %s2112_s28, 3  ;;  %v1765_v0 = vld [vmem:[#allocation4 + $0x8] sm:$0xff]  ;;  %v1767_v1 = vld [vmem:[#allocation4 + $0x18] sm:$0xff]  ;;  %vm361_vm0 = vcmask 261120  }
  0x1c   : > { %v1769_v2 = vld [vmem:[#allocation4 + $0x28] sm:$0xff]  ;;  %v1775_v3 = vld [vmem:[#allocation4 + $0x58] sm:$0xff]  ;;  %371 = vmatpush.bf16.msra.mxu0 %v1765_v0  ;;  %412 = vmatpush.bf16.msra.mxu3 %v1767_v1  ;;  %v1764_v4 = vld [vmem:[#allocation4] sm:$0xff]  ;;  %v2050_v32 = vmov 0   ;;  %vm888_vm1 = vcmask 1043456   ;;  %vm872_vm2 = vcmask 64512  }
  0x1d   : > { %s2166_s9 = scalar_select %p328_p13, %s2112_s28, 3  ;;  %v1766_v5 = vld [vmem:[#allocation4 + $0x10] sm:$0xff]  ;;  %454 = vmatpush.bf16.msra.mxu2 %v1769_v2  ;;  %580 = vmatpush.bf16.msra.mxu1 %v1775_v3  ;;  %v1768_v6 = vld [vmem:[#allocation4 + $0x20] sm:$0xff]  ;;  %v1771_v8 = vld [vmem:[#allocation4 + $0x38] sm:$0xff] }
  0x1e   : > { %v1774_v7 = vld [vmem:[#allocation4 + $0x50] sm:$0xff]  ;;  %v1773_v9 = vld [vmem:[#allocation4 + $0x48] sm:$0xff]  ;;  %v1772_v16 = vld [vmem:[#allocation4 + $0x40] sm:$0xff]  ;;  %1883 = vset.pattern.permute.xlu0 %v2050_v32  ;;  %s325_s8 = sand.u32 1, %s2036_s25   ;;  %s1761_s14 = sshll.u32 %s2112_s28, 3 }
  0x1f   : > { %s1507_s13 = sshll.u32 %s2166_s9, 2  ;;  %v1777_v14 = vld [vmem:[#allocation4 + $0x68] sm:$0xff]  ;;  %v1770_v15 = vld [vmem:[#allocation4 + $0x30] sm:$0xff]  ;;  %v1776_v17 = vld [vmem:[#allocation4 + $0x60] sm:$0xff]  ;;  %s338_s19 = scalar_lea.vmem %s2304_s2, %s2166_s9 }
  0x20   : > { %s2172_s16 = scalar_lea.vmem %s2302_s0, %s1507_s13  ;;  %372 = vmatpush.bf16.msra.mxu0 %v1764_v4  ;;  %413 = vmatpush.bf16.msra.mxu3 %v1766_v5  ;;  %v1779_v18 = vld [vmem:[#allocation4 + $0x78] sm:$0xff]  ;;  %v1778_v19 = vld [vmem:[#allocation4 + $0x70] sm:$0xff]  ;;  %v1781_v27 = vld [vmem:[#allocation4 + $0x88] sm:$0xff]  ;;  %s1508_s20 = sshll.u32 %s2166_s9, 3 }
  0x21   : > { %v340_v10 = vld [vmem:[%s2172_s16] sm:$0xf]  ;;  %455 = vmatpush.bf16.msra.mxu2 %v1768_v6  ;;  %581 = vmatpush.bf16.msra.mxu1 %v1774_v7  ;;  %v1787_v22 = vld [vmem:[#allocation4 + $0xb8] sm:$0xff]  ;;  %v1780_v28 = vld [vmem:[#allocation4 + $0x80] sm:$0xff]  ;;  %s335_s23 = scalar_lea.vmem %s2303_s1, %s1508_s20  ;;  %s1506_s13 = sshll.u32 %s325_s8, 3 }
  0x22   : > { %v380_v11 = vld [vmem:[%s2172_s16] sm:$0xf]  ;;  %v1885_v31 = vld [vmem:[%s2306_s4 + $0x5] ss:$0 sm:$0xff]  ;;  %v1888_v51 = vld [vmem:[%s2306_s4 + $0x4] ss:$0 sm:$0xff]  ;;  %s1391_s18 = scalar_lea.hbm %s2309_s7, %s1761_s14 }
  0x23   : > { %v422_v12 = vld [vmem:[%s2172_s16] sm:$0xf]  ;;  %1517 = vmatmul.msk.bf16.vlgmr.msra.gmra.mxu0 %vm361_vm0, %v340_v10  ;;  %1527 = vmatmul.msk.bf16.vlgmr.msra.gmra.mxu3 %vm361_vm0, %v380_v11  ;;  %v1890_v59 = vld [vmem:[%s2306_s4 + $0x6] ss:$0 sm:$0xff]  ;;  %s327_s22 = scalar_lea.vmem [#allocation9], %s1506_s13  ;;  %s1395_s9 = sshll.u32 %s1391_s18, 4  ;;  %s1396_s9 = int_to_ptr.hbm [resolvable:$true] %s1395_s9 }
  0x24   : > { %v548_v13 = vld [vmem:[%s2172_s16] sm:$0xf]  ;;  %496 = vmatpush.bf16.msrb.mxu3 %v1771_v8  ;;  %538 = vmatpush.bf16.msrb.mxu0 %v1773_v9  ;;  %v1891_v8 = vld [vmem:[%s2306_s4 + $0x7] ss:$0 sm:$0xff]  ;;  %s1381_s28 = scalar_lea.sflag [#allocation6], %s325_s8  ;;  %s1994_s13 = scalar_lea.hbm %s2309_s7, 32 }
  0x25   : > { %1537 = vmatmul.msk.bf16.vlgmr.msra.gmra.mxu2 %vm361_vm0, %v422_v12  ;;  %1567 = vmatmul.msk.bf16.vlgmr.msra.gmra.mxu1 %vm361_vm0, %v548_v13  ;;  %v464_v20 = vld [vmem:[%s2172_s16] sm:$0xf] }
  0x26   : > { %622 = vmatpush.bf16.msrb.mxu2 %v1777_v14  ;;  %v506_v21 = vld [vmem:[%s2172_s16] sm:$0xf] }
  0x27   : > { %v590_v23 = vld [vmem:[%s2172_s16] sm:$0xf] }
  0x28   : > { %497 = vmatpush.bf16.msrb.mxu3 %v1770_v15  ;;  %539 = vmatpush.bf16.msrb.mxu0 %v1772_v16  ;;  %v632_v24 = vld [vmem:[%s2172_s16] sm:$0xf]  ;;  %v1892_v16 = vld [vmem:[%s2306_s4 + $0xb] ss:$0 sm:$0xff] }
  0x29   : > { %v1786_v25 = vld [vmem:[#allocation4 + $0xb0] sm:$0xff] }
  0x2a   : > { %623 = vmatpush.bf16.msrb.mxu2 %v1776_v17  ;;  %v800_v26 = vld [vmem:[%s2172_s16] sm:$0xf] }
  0x2b   : > { %v674_v29 = vld [vmem:[%s2172_s16] sm:$0xf] }
  0x2c   : > { %664 = vmatpush.bf16.msra.mxu3 %v1779_v18  ;;  %706 = vmatpush.bf16.msra.mxu0 %v1781_v27  ;;  %v1884_v30 = vld [vmem:[%s2306_s4] ss:$0 sm:$0xff]  ;;  %v1886_v39 = vld [vmem:[%s2306_s4 + $0x1] ss:$0 sm:$0xff]  ;;  %v1887_v41 = vld [vmem:[%s2306_s4 + $0x2] ss:$0 sm:$0xff] }
  0x2d   : > { %v843_v33 = vld [vmem:[%s335_s23] sm:$0xff]  ;;  %s1393_s23 = sshll.u32 %s327_s22, 4  ;;  %s1394_s23 = int_to_ptr.vmem [resolvable:$true] %s1393_s23 }
  0x2e   : > { %847 = vperm.xlu0 %1883, %v843_v33   ;;  %v1889_v58 = vld [vmem:[%s2306_s4 + $0x3] ss:$0 sm:$0xff] }
  0x2f   : > { %v1782_v27 = vld [vmem:[#allocation4 + $0x90] sm:$0xff] }
  0x30   : > { %665 = vmatpush.bf16.msra.mxu3 %v1778_v19  ;;  %707 = vmatpush.bf16.msra.mxu0 %v1780_v28 }
  0x33   : > { %1547 = vmatmul.msk.bf16.vlgmr.msrb.gmra.mxu3 %vm361_vm0, %v464_v20  ;;  %1557 = vmatmul.msk.bf16.vlgmr.msrb.gmra.mxu0 %vm361_vm0, %v506_v21  ;;  %v1894_v20 = vld [vmem:[%s2306_s4 + $0x8] ss:$0 sm:$0xff] }
  0x34   : > { %832 = vmatpush.bf16.msrb.mxu3 %v1787_v22 }
  0x35   : > { %1577 = vmatmul.msk.bf16.vlgmr.msrb.gmra.mxu2 %vm361_vm0, %v590_v23 }
  0x38   : > { %833 = vmatpush.bf16.msrb.mxu3 %v1786_v25 }
  0x43   : > { %1587 = vmatmul.msk.bf16.vlgmr.msra.gmra.mxu3 %vm361_vm0, %v632_v24  ;;  %1597 = vmatmul.msk.bf16.vlgmr.msra.gmra.mxu0 %vm361_vm0, %v674_v29 }
  0x53   : > { %1627 = vmatmul.msk.bf16.vlgmr.msrb.gmra.mxu3 %vm361_vm0, %v800_v26  ;;  %v1783_v26 = vld [vmem:[#allocation4 + $0x98] sm:$0xff] }
  0x54   : > { %748 = vmatpush.bf16.msrb.mxu1 %v1783_v26 }
  0x58   : > { %749 = vmatpush.bf16.msrb.mxu1 %v1782_v27 }
  0xa0   : > { %v374_v34 = vpop.f32.mrf.mxu0 }
  0xa1   : > { %v375_v35 = vadd.f32 %v1884_v30, %v374_v34  ;;  %v1893_v30 = vld [vmem:[%s338_s19] ss:$0 sm:$0xff] }
  0xa2   : > { %v583_v36 = vpop.f32.mrf.mxu1 }
  0xa3   : > { %v584_v37 = vadd.f32 %v1885_v31, %v583_v36  ;;  %v378_v38 = vpack.c.bf16 %v375_v35, %v375_v35  ;;  %v848_v31 = vpop.permute.xlu0 %847 }
  0xa4   : > { %v853_v32 = vmul.f32 %v1893_v30, %v848_v31 }
  0xa5   : > { %v587_v40 = vpack.c.bf16 %v584_v37, %v584_v37  ;;  %379 = vst [vmem:[#allocation2] sm:$0xf] %v378_v38 }
  0xa6   : > { %v415_v42 = vpop.f32.mrf.mxu3  ;;  %v854_v33 = vsub.f32 1.0, %v853_v32 }
  0xa7   : > { %589 = vst [vmem:[#allocation2 + $0x14] sm:$0xf] %v587_v40  ;;  %v416_v43 = vadd.f32 %v1886_v39, %v415_v42  ;;  %v1785_v42 = vld [vmem:[#allocation4 + $0xa8] sm:$0xff] }
  0xa8   : > { %v457_v44 = vpop.f32.mrf.mxu2  ;;  %v376_v46 = vpop.f32.mrf.mxu0  ;;  %v855_v34 = vmul.f32 -1000000.0, %v854_v33  ;;  %790 = vmatpush.bf16.msra.mxu2 %v1785_v42  ;;  %v1792_v42 = vld [vmem:[#allocation7 + $0x20] sm:$0xff] }
  0xa9   : > { %v458_v45 = vadd.f32 %v1887_v41, %v457_v44  ;;  %v419_v47 = vpack.c.bf16 %v416_v43, %v416_v43  ;;  %v716_v43 = vld [vmem:[%s2172_s16] sm:$0xf]  ;;  %v1784_v44 = vld [vmem:[#allocation4 + $0xa0] sm:$0xff] }
  0xaa   : > { %v585_v48 = vpop.f32.mrf.mxu1  ;;  %1607 = vmatmul.msk.bf16.vlgmr.msrb.gmra.mxu1 %vm361_vm0, %v716_v43  ;;  %v758_v46 = vld [vmem:[%s2172_s16] sm:$0xf]  ;;  %v1800_v43 = vld [vmem:[#allocation7 + $0x60] sm:$0xff]  ;;  %s1988_s16 = sshra.s32 %s1396_s9, 4  ;;  %s1989_s16 = int_to_ptr.hbm [resolvable:$true] %s1988_s16 }
  0xab   : > { %v461_v49 = vpack.c.bf16 %v458_v45, %v458_v45  ;;  %421 = vst [vmem:[#allocation2 + $0x4] sm:$0xf] %v419_v47  ;;  %s1990_s19 = scalar_lea.hbm %s1989_s16, 8  ;;  %p1995_p3 = scmp.lt.s32.totalorder %s1989_s16, %s2309_s7 }
  0xac   : > { %v856_v7 = vld [vmem:[#allocation2] sm:$0xf]  ;;  %791 = vmatpush.bf16.msra.mxu2 %v1784_v44  ;;  %p1991_p0 = scmp.ne.s32.totalorder %s1989_s16, %s1990_s19  ;;  %p1996_p4 = scmp.lt.s32.totalorder %s1994_s13, %s1990_s19 }
  0xad   : > { %463 = vst [vmem:[#allocation2 + $0x8] sm:$0xf] %v461_v49 }
  0xae   : > { %v987_v50 = vld [vmem:[#allocation2 + $0x14] sm:$0xf]  ;;  %v417_v52 = vpop.f32.mrf.mxu3  ;;  %p1992_p1 = pnand %p1991_p0, %p2129_p5  ;;  %p1997_p7 = por %p1996_p4, %p1995_p3 }
  0xaf   : > { %996 = vmatpush.bf16.xpose.msra.mxu3 %v987_v50  ;;  %1617 = vmatmul.msk.bf16.vlgmr.msra.gmra.mxu2 %vm361_vm0, %v758_v46 }
  0xb0   : > { %v459_v53 = vpop.f32.mrf.mxu2  ;;  %v541_v54 = vpop.f32.mrf.mxu0  ;;  %p1993_p2 = pneg %p1992_p1 }
  0xb1   : > { %v542_v55 = vadd.f32 %v1888_v51, %v541_v54 }
  0xb2   : > { %v986_v56 = vld [vmem:[#allocation2 + $0x4] sm:$0xf]  ;;  %p1998_p8 = pnand %p1997_p7, %p1993_p2 }
  0xb3   : > { %v545_v57 = vpack.c.bf16 %v542_v55, %v542_v55 }
  0xb4   : > { %v1115_v12 = vld [vmem:[#allocation2 + $0x8] sm:$0xf] }
  0xb5   : > { %547 = vst [vmem:[#allocation2 + $0x10] sm:$0xf] %v545_v57 }
  0xb6   : > { %997 = vmatmul.bf16.vlgmr.msra.gmra.mxu3 %v986_v56  ;;  %v499_v60 = vpop.f32.mrf.mxu3 }
  0xb7   : > { %v500_v61 = vadd.f32 %v1889_v58, %v499_v60 }
  0xb8   : > { %v625_v62 = vpop.f32.mrf.mxu2  ;;  %v543_v0 = vpop.f32.mrf.mxu0 }
  0xb9   : > { %v626_v63 = vadd.f32 %v1890_v59, %v625_v62  ;;  %v503_v1 = vpack.c.bf16 %v500_v61, %v500_v61 }
  0xbb   : > { %v629_v2 = vpack.c.bf16 %v626_v63, %v626_v63  ;;  %505 = vst [vmem:[#allocation2 + $0xc] sm:$0xf] %v503_v1  ;;  %v1895_v63 = vld [vmem:[%s2306_s4 + $0x9] ss:$0 sm:$0xff] }
  0xbc   : > { %v857_v3 = vld [vmem:[#allocation2 + $0x10] sm:$0xf] }
  0xbd   : > { %631 = vst [vmem:[#allocation2 + $0x18] sm:$0xf] %v629_v2  ;;  %866 = vmatpush.bf16.xpose.msrb.mxu0 %v857_v3 }
  0xbe   : > { %v501_v4 = vpop.f32.mrf.mxu3 }
  0xc0   : > { %v627_v5 = vpop.f32.mrf.mxu2  ;;  %v709_v22 = vpop.f32.mrf.mxu0 }
  0xc1   : > { %v710_v23 = vadd.f32 %v1894_v20, %v709_v22 }
  0xc2   : > { %v1244_v15 = vld [vmem:[#allocation2 + $0xc] sm:$0xf] }
  0xc3   : > { %v713_v24 = vpack.c.bf16 %v710_v23, %v710_v23 }
  0xc4   : > { %v1116_v6 = vld [vmem:[#allocation2 + $0x18] sm:$0xf]  ;;  %867 = vmatmul.bf16.vlgmr.msrb.gmra.mxu0 %v856_v7 }
  0xc5   : > { %1125 = vmatpush.bf16.xpose.msrb.mxu3 %v1116_v6  ;;  %715 = vst [vmem:[#allocation2 + $0x20] sm:$0xf] %v713_v24 }
  0xc6   : > { %v667_v9 = vpop.f32.mrf.mxu3 }
  0xc7   : > { %v668_v10 = vadd.f32 %v1891_v8, %v667_v9  ;;  %v1896_v9 = vld [vmem:[%s2306_s4 + $0xa] ss:$0 sm:$0xff] }
  0xc8   : > { %v711_v25 = vpop.f32.mrf.mxu0 }
  0xc9   : > { %v671_v11 = vpack.c.bf16 %v668_v10, %v668_v10 }
  0xcb   : > { %673 = vst [vmem:[#allocation2 + $0x1c] sm:$0xf] %v671_v11 }
  0xcc   : > { %1126 = vmatmul.bf16.vlgmr.msrb.gmra.mxu3 %v1115_v12  ;;  %v858_v28 = vld [vmem:[#allocation2 + $0x20] sm:$0xf] }
  0xcd   : > { %v890_v29 = vsel %vm888_vm1, %v858_v28, 0 }
  0xce   : > { %v669_v13 = vpop.f32.mrf.mxu3  ;;  %899 = vmatpush.bf16.msra.mxu1 %v890_v29 }
  0xd2   : > { %v1245_v14 = vld [vmem:[#allocation2 + $0x1c] sm:$0xf] }
  0xd3   : > { %1254 = vmatpush.bf16.xpose.msra.mxu3 %v1245_v14 }
  0xd6   : > { %v835_v17 = vpop.f32.mrf.mxu3 }
  0xd7   : > { %v836_v18 = vadd.f32 %v1892_v16, %v835_v17 }
  0xd9   : > { %v839_v19 = vpack.c.bf16 %v836_v18, %v836_v18 }
  0xdb   : > { %841 = vst [vmem:[#allocation2 + $0x2c] sm:$0xf] %v839_v19 }
  0xdc   : > { %1255 = vmatmul.bf16.vlgmr.msra.gmra.mxu3 %v1244_v15 }
  0xde   : > { %v837_v21 = vpop.f32.mrf.mxu3 }
  0xe2   : > { %v1246_v29 = vld [vmem:[#allocation2 + $0x2c] sm:$0xf] }
  0xe3   : > { %v1276_v31 = vsel %vm888_vm1, %v1246_v29, 0 }
 0x127   : > { %v751_v2 = vpop.f32.mrf.mxu1 }
 0x128   : > { %v752_v4 = vadd.f32 %v1895_v63, %v751_v2  ;;  %v1819_v63 = vld [vmem:[#allocation7 + $0xf8] sm:$0xff]  ;;  %v1806_v2 = vld [vmem:[#allocation7 + $0x90] sm:$0xff] }
 0x12a   : > { %v755_v6 = vpack.c.bf16 %v752_v4, %v752_v4  ;;  %v1805_v4 = vld [vmem:[#allocation7 + $0x88] sm:$0xff] }
 0x12c   : > { %757 = vst [vmem:[#allocation2 + $0x24] sm:$0xf] %v755_v6  ;;  %v1804_v6 = vld [vmem:[#allocation7 + $0x80] sm:$0xff] }
 0x12f   : > { %v753_v8 = vpop.f32.mrf.mxu1 }
 0x130   : > { %v1814_v8 = vld [vmem:[#allocation7 + $0xd0] sm:$0xff] }
 0x132   : > { %v793_v12 = vpop.f32.mrf.mxu2 }
 0x133   : > { %v794_v13 = vadd.f32 %v1896_v9, %v793_v12  ;;  %v988_v21 = vld [vmem:[#allocation2 + $0x24] sm:$0xf]  ;;  %v1812_v12 = vld [vmem:[#allocation7 + $0xc0] sm:$0xff] }
 0x134   : > { %v1018_v22 = vsel %vm888_vm1, %v988_v21, 0 }
 0x135   : > { %v797_v15 = vpack.c.bf16 %v794_v13, %v794_v13  ;;  %1027 = vmatpush.bf16.msra.mxu0 %v1018_v22 }
 0x137   : > { %799 = vst [vmem:[#allocation2 + $0x28] sm:$0xf] %v797_v15 }
 0x139   : > { %v998_v35 = vpop.f32.mrf.mxu3 }
 0x13a   : > { %v999_v36 = vadd.f32 %v998_v35, %v855_v34  ;;  %v795_v18 = vpop.f32.mrf.mxu2  ;;  %v1803_v35 = vld [vmem:[#allocation7 + $0x78] sm:$0xff] }
 0x13b   : > { %1100 = vmatpush.bf16.msrb.mxu1 %v1803_v35 }
 0x13c   : > { %v1002_v37 = vsel %vm872_vm2, %v999_v36, -inf }
 0x13d   : > { %1003 = vmax.xlane.f32.xlu0 %v1002_v37  ;;  %v1794_v37 = vld [vmem:[#allocation7 + $0x30] sm:$0xff] }
 0x13e   : > { %v1117_v23 = vld [vmem:[#allocation2 + $0x28] sm:$0xf] }
 0x13f   : > { %v1147_v24 = vsel %vm888_vm1, %v1117_v23, 0 }
 0x140   : > { %1156 = vmatpush.bf16.msrb.mxu0 %v1147_v24 }
 0x141   : > { %v1000_v38 = vpop.f32.mrf.mxu3  ;;  %v868_v39 = vpop.f32.mrf.mxu0 }
 0x142   : > { %v869_v40 = vadd.f32 %v868_v39, %v855_v34  ;;  %v1802_v38 = vld [vmem:[#allocation7 + $0x70] sm:$0xff] }
 0x143   : > { %1101 = vmatpush.bf16.msrb.mxu1 %v1802_v38 }
 0x144   : > { %v873_v41 = vsel %vm872_vm2, %v869_v40, -inf }
 0x145   : > { %874 = vmax.xlane.f32.xlu1 %v873_v41  ;;  %v1801_v41 = vld [vmem:[#allocation7 + $0x68] sm:$0xff] }
 0x147   : > { %1102 = vmatpush.bf16.msrb.mxu1 %v1801_v41 }
 0x149   : > { %v870_v45 = vpop.f32.mrf.mxu0 }
 0x14b   : > { %1103 = vmatpush.bf16.msrb.mxu1 %v1800_v43 }
 0x14f   : > { %v1127_v47 = vpop.f32.mrf.mxu3 }
 0x150   : > { %v1128_v48 = vadd.f32 %v1127_v47, %v855_v34  ;;  %v1791_v47 = vld [vmem:[#allocation7 + $0x18] sm:$0xff] }
 0x152   : > { %v1131_v49 = vsel %vm872_vm2, %v1128_v48, -inf }
 0x153   : > { %1132 = vmax.xlane.f32.xlu1 %v1131_v49  ;;  %v1790_v49 = vld [vmem:[#allocation7 + $0x10] sm:$0xff] }
 0x157   : > { %v1129_v50 = vpop.f32.mrf.mxu3 }
 0x158   : > { %v1798_v50 = vld [vmem:[#allocation7 + $0x50] sm:$0xff] }
 0x15f   : > { %v1256_v51 = vpop.f32.mrf.mxu3 }
 0x160   : > { %v1257_v52 = vadd.f32 %v1256_v51, %v855_v34  ;;  %v1795_v34 = vld [vmem:[#allocation7 + $0x38] sm:$0xff] }
 0x161   : > { %971 = vmatpush.bf16.msrb.mxu2 %v1795_v34 }
 0x162   : > { %v1260_v53 = vsel %vm872_vm2, %v1257_v52, -inf }
 0x163   : > { %1261 = vmax.xlane.f32.xlu2 %v1260_v53  ;;  %v1797_v53 = vld [vmem:[#allocation7 + $0x48] sm:$0xff] }
 0x165   : > { %972 = vmatpush.bf16.msrb.mxu2 %v1794_v37 }
 0x167   : > { %v1258_v54 = vpop.f32.mrf.mxu3 }
 0x168   : > { %v1788_v54 = vld [vmem:[#allocation7] sm:$0xff] }
 0x1b0   : > { %v1004_v55 = vpop.xlane.xlu0 %1003 }
 0x1b1   : > { %v1005_v56 = vsub.f32 %v999_v36, %v1004_v55 }
 0x1b3   : > { %v1006_v57 = vmul.f32 1.442695, %v1005_v56  ;;  %v1811_v56 = vld [vmem:[#allocation7 + $0xb8] sm:$0xff] }
 0x1b5   : > { %1898 = vpow2.f32 %v1006_v57 }
 0x1b8   : > { %v875_v58 = vpop.xlane.xlu1 %874 }
 0x1b9   : > { %v876_v59 = vsub.f32 %v869_v40, %v875_v58  ;;  %v1793_v40 = vld [vmem:[#allocation7 + $0x28] sm:$0xff] }
 0x1ba   : > { %973 = vmatpush.bf16.msrb.mxu2 %v1793_v40 }
 0x1bb   : > { %v1899_v60 = vpop.eup %1898  ;;  %v877_v61 = vmul.f32 1.442695, %v876_v59  ;;  %v1796_v59 = vld [vmem:[#allocation7 + $0x40] sm:$0xff] }
 0x1bc   : > { %v1008_v62 = vsel %vm872_vm2, %v1899_v60, 0.0 }
 0x1bd   : > { %1009 = vadd.xlane.f32.xlu2 %v1008_v62  ;;  %1900 = vpow2.f32 %v877_v61  ;;  %v1809_v61 = vld [vmem:[#allocation7 + $0xa8] sm:$0xff]  ;;  %v1808_v62 = vld [vmem:[#allocation7 + $0xa0] sm:$0xff] }
 0x1be   : > { %974 = vmatpush.bf16.msrb.mxu2 %v1792_v42 }
 0x1c2   : > { %975 = vmatpush.bf16.msrb.mxu2 %v1791_v47 }
 0x1c3   : > { %v1901_v0 = vpop.eup %1900 }
 0x1c4   : > { %v879_v1 = vsel %vm872_vm2, %v1901_v0, 0.0 }
 0x1c5   : > { %880 = vadd.xlane.f32.xlu1 %v879_v1  ;;  %v1818_v1 = vld [vmem:[#allocation7 + $0xf0] sm:$0xff] }
 0x1c6   : > { %v1133_v3 = vpop.xlane.xlu1 %1132  ;;  %976 = vmatpush.bf16.msrb.mxu2 %v1790_v49 }
 0x1c7   : > { %v1134_v5 = vsub.f32 %v1128_v48, %v1133_v3  ;;  %v1799_v48 = vld [vmem:[#allocation7 + $0x58] sm:$0xff]  ;;  %v1817_v3 = vld [vmem:[#allocation7 + $0xe8] sm:$0xff] }
 0x1c8   : > { %1104 = vmatpush.bf16.msrb.mxu1 %v1799_v48 }
 0x1c9   : > { %v1135_v7 = vmul.f32 1.442695, %v1134_v5  ;;  %v1816_v5 = vld [vmem:[#allocation7 + $0xe0] sm:$0xff] }
 0x1cb   : > { %1902 = vpow2.f32 %v1135_v7  ;;  %v1815_v7 = vld [vmem:[#allocation7 + $0xd8] sm:$0xff] }
 0x1cc   : > { %1105 = vmatpush.bf16.msrb.mxu1 %v1798_v50 }
 0x1d0   : > { %1106 = vmatpush.bf16.msrb.mxu1 %v1797_v53 }
 0x1d1   : > { %v1903_v10 = vpop.eup %1902 }
 0x1d2   : > { %v1137_v11 = vsel %vm872_vm2, %v1903_v10, 0.0 }
 0x1d3   : > { %1138 = vadd.xlane.f32.xlu2 %v1137_v11 }
 0x1d4   : > { %1107 = vmatpush.bf16.msrb.mxu1 %v1796_v59 }
 0x1d6   : > { %v1262_v14 = vpop.xlane.xlu2 %1261 }
 0x1d7   : > { %v1263_v16 = vsub.f32 %v1257_v52, %v1262_v14  ;;  %v1789_v52 = vld [vmem:[#allocation7 + $0x8] sm:$0xff] }
 0x1d8   : > { %977 = vmatpush.bf16.msrb.mxu2 %v1789_v52 }
 0x1d9   : > { %v1264_v17 = vmul.f32 1.442695, %v1263_v16 }
 0x1db   : > { %1904 = vpow2.f32 %v1264_v17 }
 0x1dc   : > { %978 = vmatpush.bf16.msrb.mxu2 %v1788_v54 }
 0x1e0   : > { %1229 = vmatpush.bf16.msra.mxu2 %v1811_v56 }
 0x1e1   : > { %v2255_v19 = vpop.eup %1904 }
 0x1e2   : > { %v1266_v20 = vsel %vm872_vm2, %v2255_v19, 0.0 }
 0x1e3   : > { %1267 = vadd.xlane.f32.xlu1 %v1266_v20 }
 0x230   : > { %v1010_v25 = vpop.xlane.xlu2 %1009 }
 0x231   : > { %1906 = vrcp.f32 %v1010_v25 }
 0x237   : > { %v1907_v26 = vpop.eup %1906 }
 0x238   : > { %v1012_v27 = vmul.f32 %v1907_v26, %v1899_v60  ;;  %v881_v28 = vpop.xlane.xlu1 %880  ;;  %v1810_v60 = vld [vmem:[#allocation7 + $0xb0] sm:$0xff] }
 0x239   : > { %1908 = vrcp.f32 %v881_v28  ;;  %1230 = vmatpush.bf16.msra.mxu2 %v1810_v60 }
 0x23a   : > { %v1013_v30 = vpack.c.bf16 %v1012_v27, %v1012_v27 }
 0x23c   : > { %1661 = vmatmul.msk.bf16.vlgmr.msra.gmra.mxu0 %vm872_vm2, %v1013_v30  ;;  %v1897_v30 = vld [vmem:[%s2308_s6] ss:$0 sm:$0xff] }
 0x23d   : > { %1285 = vmatpush.bf16.msra.mxu0 %v1276_v31  ;;  %1231 = vmatpush.bf16.msra.mxu2 %v1809_v61 }
 0x23f   : > { %v1909_v32 = vpop.eup %1908 }
 0x240   : > { %v883_v33 = vmul.f32 %v1909_v32, %v1901_v0  ;;  %v1807_v0 = vld [vmem:[#allocation7 + $0x98] sm:$0xff] }
 0x241   : > { %1232 = vmatpush.bf16.msra.mxu2 %v1808_v62 }
 0x242   : > { %v884_v36 = vpack.c.bf16 %v883_v33, %v883_v33 }
 0x244   : > { %1628 = vmatmul.msk.bf16.vlgmr.msra.gmra.mxu1 %vm872_vm2, %v884_v36 }
 0x245   : > { %1358 = vmatpush.bf16.msra.mxu1 %v1819_v63  ;;  %1233 = vmatpush.bf16.msra.mxu2 %v1807_v0 }
 0x246   : > { %v1139_v39 = vpop.xlane.xlu2 %1138 }
 0x247   : > { %1910 = vrcp.f32 %v1139_v39 }
 0x249   : > { %1359 = vmatpush.bf16.msra.mxu1 %v1818_v1  ;;  %1234 = vmatpush.bf16.msra.mxu2 %v1806_v2 }
 0x24d   : > { %v1911_v44 = vpop.eup %1910  ;;  %1360 = vmatpush.bf16.msra.mxu1 %v1817_v3  ;;  %1235 = vmatpush.bf16.msra.mxu2 %v1805_v4 }
 0x24e   : > { %v1141_v45 = vmul.f32 %v1911_v44, %v1903_v10  ;;  %v1813_v10 = vld [vmem:[#allocation7 + $0xc8] sm:$0xff] }
 0x250   : > { %v1142_v46 = vpack.c.bf16 %v1141_v45, %v1141_v45 }
 0x251   : > { %1361 = vmatpush.bf16.msra.mxu1 %v1816_v5  ;;  %1236 = vmatpush.bf16.msra.mxu2 %v1804_v6 }
 0x252   : > { %1694 = vmatmul.msk.bf16.vlgmr.msrb.gmra.mxu0 %vm872_vm2, %v1142_v46 }
 0x255   : > { %1362 = vmatpush.bf16.msra.mxu1 %v1815_v7 }
 0x256   : > { %v1268_v51 = vpop.xlane.xlu1 %1267 }
 0x257   : > { %1912 = vrcp.f32 %v1268_v51 }
 0x259   : > { %1363 = vmatpush.bf16.msra.mxu1 %v1814_v8 }
 0x25d   : > { %v1913_v55 = vpop.eup %1912  ;;  %1364 = vmatpush.bf16.msra.mxu1 %v1813_v10 }
 0x25e   : > { %v1270_v57 = vmul.f32 %v1913_v55, %v2255_v19 }
 0x260   : > { %v1271_v58 = vpack.c.bf16 %v1270_v57, %v1270_v57 }
 0x261   : > { %1365 = vmatpush.bf16.msra.mxu1 %v1812_v12 }
 0x262   : > { %1727 = vmatmul.msk.bf16.vlgmr.msra.gmra.mxu0 %vm872_vm2, %v1271_v58 }
 0x2b9   : > { %v1029_v9 = vpop.f32.mrf.mxu0 }
 0x2ba   : > { %v1034_v11 = vpack.c.bf16 %v1029_v9, %v1029_v9 }
 0x2bc   : > { %1108 = vmatmul.bf16.vlgmr.msrb.gmra.mxu1 %v1034_v11 }
 0x2c1   : > { %v1031_v13 = vpop.f32.mrf.mxu0  ;;  %v901_v14 = vpop.f32.mrf.mxu1 }
 0x2c2   : > { %v906_v15 = vpack.c.bf16 %v901_v14, %v901_v14 }
 0x2c4   : > { %979 = vmatmul.bf16.vlgmr.msrb.gmra.mxu2 %v906_v15 }
 0x2c9   : > { %v903_v16 = vpop.f32.mrf.mxu1 }
 0x2cf   : > { %v1158_v17 = vpop.f32.mrf.mxu0 }
 0x2d0   : > { %v1163_v18 = vpack.c.bf16 %v1158_v17, %v1158_v17 }
 0x2d4   : > { %1237 = vmatmul.bf16.vlgmr.msra.gmra.mxu2 %v1163_v18 }
 0x2d7   : > { %v1160_v19 = vpop.f32.mrf.mxu0 }
 0x2df   : > { %v1287_v20 = vpop.f32.mrf.mxu0 }
 0x2e0   : > { %v1292_v21 = vpack.c.bf16 %v1287_v20, %v1287_v20 }
 0x2e2   : > { %1366 = vmatmul.bf16.vlgmr.msra.gmra.mxu1 %v1292_v21 }
 0x2e7   : > { %v1289_v22 = vpop.f32.mrf.mxu0 }
 0x339   : > { %v1109_v23 = vpop.f32.mrf.mxu1 }
 0x341   : > { %v1111_v24 = vpop.f32.mrf.mxu1 }
 0x347   : > { %v980_v25 = vpop.f32.mrf.mxu2 }
 0x348   : > { %v1113_v28 = vadd.f32 %v1109_v23, %v980_v25 }
 0x34f   : > { %v982_v26 = vpop.f32.mrf.mxu2 }
 0x357   : > { %v1238_v27 = vpop.f32.mrf.mxu2 }
 0x358   : > { %v1242_v29 = vadd.f32 %v1238_v27, %v1113_v28 }
 0x35f   : > { %v1367_v31 = vpop.f32.mrf.mxu1  ;;  %v1240_v33 = vpop.f32.mrf.mxu2 }
 0x360   : > { %v1371_v32 = vadd.f32 %v1367_v31, %v1242_v29 }
 0x362   : > { %v1378_v34 = vadd.f32 %v1897_v30, %v1371_v32 }
 0x364   : > { %1379 = vst [vmem:[%s327_s22] sm:$0xff] %v1378_v34 }
 0x365   : > { %2001 = shalt.err (!%p1998_p8)
}
 0x366   : > { %1828 = dma.vmem_to_hbm [thread:$0]  (%p2129_p5), %s1394_s23, 128, %s1396_s9, %s1381_s28  }
 0x367   : > { %v1369_v35 = vpop.f32.mrf.mxu1 }
 0x368 PF: > { %p1845_p9 = scmp.ge.s32.totalorder %s2044_s27, 2  ;;  %s1407_s8 = sand.u32 1, %s2032_s24  }
 0x369   : > { %s1408_s18 = scalar_lea.sflag [#allocation6], %s1407_s8 }
 0x36a   : > { %p1838_p10 = pnand %p1845_p9, %p2133_p6 }
 0x36c   : > { %p1839_p11 = pneg %p1838_p10 }
 0x36e   : > { %2027 = dma.done.wait (%p1839_p11), %s1408_s18, 128  }
 0x36f   : > { %2029 = vsyncadd (%p1839_p11), %s1408_s18, 4294967168  ;;  %p19_p12 = scmp.ge.s32.totalorder %s2116_s30, 6   ;;  %s2313_s24 = smov %s2036_s25 }
 0x370   : > { %s2314_s25 = smov %s2040_s26  ;;  %s2315_s26 = smov %s2127_s10 }
 0x371   : > { %s2316_s27 = smov %s2116_s30  ;;  %21 = sbr.rel (!%p19_p12) target bundleno = 5 (0x5), region = 134 }
 0x376   :  { %1414 = vsyncpa [#allocation5], 1 }
 0x377   :  { %1416 = vsyncpa [#allocation5 + $0x1], 1 }
 0x378   :  { %1417 = vsyncpa [#allocation8], 1 }
 0x379   :  { %1418 = vsyncpa [#allocation6], 1 }
 0x37a   :  { %1420 = vsyncpa [#allocation6 + $0x1], 1 }

</bundles_post_ra>
